<compile_context>
chip_gen: v7x
topology: tpu7x:2x2x1
jax: 0.10.0
libtpu: 0.0.40
codegen_flags: <defaults>
</compile_context>

<pallas_src>
import jax
import jax.numpy as jnp
import numpy as np
from jax.experimental import pallas as pl
from jax.experimental.pallas import tpu as pltpu

EPS = 1e-5


# ----------------------------- Pallas kernel -------------------------------
def autoencoder_kernel(x_ref,
                       w0, b0, w1, b1, w2, b2, w3, b3, w4, b4,   # encoder (BN folded)
                       dw0, db0, dw1, db1, dw2, db2,             # decoder
                       enc_ref, rec_ref):
    # x_ref: (b*N, 3) f32, point-major, whole batch fused into the M dim.
    x = x_ref[...]

    # --- Layer 0 (3 -> 64): K=3 contraction as three VPU FMAs (f32). -------
    w0f = w0[...]                                                # (3, 64) f32
    h = (x[:, 0:1] * w0f[0:1, :]
         + x[:, 1:2] * w0f[1:2, :]
         + x[:, 2:3] * w0f[2:3, :]) + b0[...]
    h = jnp.maximum(h, 0.0)                                      # (M, 64) f32

    def mm_relu(a, w_ref, b_ref):
        # bf16 operands on the MXU, f32 accumulation, f32 epilogue.
        acc = jnp.dot(a.astype(w_ref.dtype), w_ref[...],
                      preferred_element_type=jnp.float32)
        return jnp.maximum(acc + b_ref[...], 0.0)

    # --- Encoder 64 -> 128 -> 128 -> 256 -> k_pad, M = b*N ------------------
    h = mm_relu(h, w1, b1)
    h = mm_relu(h, w2, b2)
    h = mm_relu(h, w3, b3)
    h = mm_relu(h, w4, b4)                                       # (M, k_pad)

    # --- AdaptiveMaxPool1d(1): max over the point axis, per batch item ------
    b_sz = enc_ref.shape[0]
    n_pts = h.shape[0] // b_sz
    enc = jnp.max(h.reshape(b_sz, n_pts, h.shape[1]), axis=1)    # (b, k_pad)
    enc_ref[...] = enc                                           # lane-dense store

    # --- Decoder k_pad -> 256 -> 256 -> 3N_pad, M = b ------------------------
    d = mm_relu(enc, dw0, db0)                                   # (b, 256)
    d = mm_relu(d, dw1, db1)                                     # (b, 256)
    out = jnp.dot(d.astype(dw2.dtype), dw2[...],
                  preferred_element_type=jnp.float32) + db2[...]
    rec_ref[...] = out                                           # (b, 3N_pad)


# ------------------------------ glue / wrapper ------------------------------
def _round_up(v, m):
    return ((v + m - 1) // m) * m


def _fold_bn(w_oi, gamma, beta, mean, var):
    """Fold Conv1d(k=1, bias=False) + eval BatchNorm1d into (W_eff, b_eff) in f32."""
    scale = gamma / jnp.sqrt(var + EPS)                    # (C_out,)
    w_eff = w_oi.T * scale[None, :]                        # (C_in, C_out)
    b_eff = (beta - mean * scale).reshape(1, -1)           # (1, C_out)
    return w_eff, b_eff


def make_params(key, k, num_points, w_dtype=jnp.bfloat16):
    """Deterministic synthetic parameters matching the PyTorch module shapes.

    Zero-pads k -> k_pad (128-multiple) on the last encoder layer / first
    decoder layer and 3N -> 3N_pad on the last decoder layer so all kernel
    outputs are lane-dense.  Padding is exact zeros, so results are unchanged.
    """
    enc_units = [3, 64, 128, 128, 256, k]
    dec_units = [k, 256, 256]
    k_pad = _round_up(k, 128)
    c_out = num_points * 3
    c_pad = _round_up(c_out, 128)
    keys = iter(jax.random.split(key, 64))
    flat = []

    def bn(c):
        g = jax.random.uniform(next(keys), (c,), minval=0.5, maxval=1.5)
        b = jax.random.normal(next(keys), (c,)) * 0.1
        m = jax.random.normal(next(keys), (c,)) * 0.1
        v = jax.random.uniform(next(keys), (c,), minval=0.5, maxval=1.5)
        return g, b, m, v

    def pad_cols(w, b, width):
        if width > w.shape[1]:
            w = jnp.zeros((w.shape[0], width), w.dtype).at[:, :w.shape[1]].set(w)
            b = jnp.zeros((1, width), b.dtype).at[:, :b.shape[1]].set(b)
        return w, b

    # encoder: Conv1d(n->m, bias=False) + BN + ReLU
    n_enc = len(enc_units) - 1
    for li, (n, m) in enumerate(zip(enc_units[:-1], enc_units[1:])):
        w = jax.random.normal(next(keys), (m, n)) * (1.0 / np.sqrt(n))
        w_eff, b_eff = _fold_bn(w, *bn(m))
        if li == n_enc - 1:                                # last encoder layer: k -> k_pad
            w_eff, b_eff = pad_cols(w_eff, b_eff, k_pad)
        dt = jnp.float32 if li == 0 else w_dtype           # layer 0 stays f32 (VPU FMA)
        flat.extend([w_eff.astype(dt), b_eff.astype(jnp.float32)])

    # decoder first two: Conv1d(bias=False) + BN + ReLU
    for li, (n, m) in enumerate(zip(dec_units[:-1], dec_units[1:])):
        w = jax.random.normal(next(keys), (m, n)) * (1.0 / np.sqrt(n))
        w_eff, b_eff = _fold_bn(w, *bn(m))
        if li == 0 and k_pad > k:                          # pad input rows k -> k_pad (zeros)
            w_eff = jnp.zeros((k_pad, w_eff.shape[1]),
                              w_eff.dtype).at[:k, :].set(w_eff)
        flat.extend([w_eff.astype(w_dtype), b_eff.astype(jnp.float32)])

    # decoder last: Conv1d(256 -> num_points*3, kernel_size=1) WITH bias, no BN
    w = jax.random.normal(next(keys), (c_out, 256)) * (1.0 / np.sqrt(256))
    bias = jax.random.normal(next(keys), (c_out,)) * 0.1
    w_t = jnp.zeros((256, c_pad), jnp.float32).at[:, :c_out].set(w.T)
    b_p = jnp.zeros((1, c_pad), jnp.float32).at[:, :c_out].set(bias.reshape(1, -1))
    flat.append(w_t.astype(w_dtype))
    flat.append(b_p)
    return flat


def autoencoder_forward(x, params, k, num_points):
    """x: (b, 3, num_points) f32 -> (encoding (b,k,1), restoration (b,3,num_points))."""
    b = x.shape[0]
    N = num_points
    k_pad = params[9].shape[-1]                                  # padded k (last encoder bias)
    np3 = params[-1].shape[-1]                                   # padded 3N (128-multiple)
    # Point-major, batch fused into the matmul M dimension.
    x_flat = jnp.transpose(x, (0, 2, 1)).reshape(b * N, 3).astype(jnp.float32)

    n_inputs = 1 + len(params)
    vmem_spec = pl.BlockSpec(memory_space=pltpu.MemorySpace.VMEM)

    enc, rec = pl.pallas_call(
        autoencoder_kernel,
        in_specs=[vmem_spec] * n_inputs,
        out_specs=[vmem_spec, vmem_spec],
        out_shape=[jax.ShapeDtypeStruct((b, k_pad), jnp.float32),
                   jax.ShapeDtypeStruct((b, np3), jnp.float32)],
    )(x_flat, *params)

    encoding = enc[:, :k, None]                                  # drop padding -> (b, k, 1)
    restoration = rec[:, :3 * N].reshape(b, 3, N)                # drop padding, view(b,3,N)
    return encoding, restoration


def reference_forward(x, params, k, num_points):
    """Pure-JAX reference using the same (bf16-rounded, BN-folded, padded) parameters."""
    b = x.shape[0]
    N = num_points
    ws = [jnp.asarray(p, jnp.float32) for p in params]
    h = jnp.transpose(x, (0, 2, 1)).astype(jnp.float32)          # (b, N, 3)
    for i in range(5):                                           # encoder
        h = jnp.maximum(h @ ws[2 * i] + ws[2 * i + 1], 0.0)
    enc = jnp.max(h, axis=1)                                     # (b, k_pad)
    d = jnp.maximum(enc @ ws[10] + ws[11], 0.0)
    d = jnp.maximum(d @ ws[12] + ws[13], 0.0)
    out = d @ ws[14] + ws[15]                                    # (b, 3N_pad)
    rec = out[:, :3 * N].reshape(b, 3, N)
    return enc[:, :k, None], rec


# ---------------------------------- main ------------------------------------
if __name__ == "__main__":
    K = 32
    NUM_POINTS = 64
    BATCH = 2

    key = jax.random.PRNGKey(0)
    kx, kp = jax.random.split(key)
    x = jax.random.normal(kx, (BATCH, 3, NUM_POINTS), dtype=jnp.float32)
    params = make_params(kp, K, NUM_POINTS)

    encoding, restoration = autoencoder_forward(x, params, K, NUM_POINTS)
    encoding = jax.block_until_ready(encoding)
    restoration = jax.block_until_ready(restoration)

    ref_enc, ref_rec = reference_forward(x, params, K, NUM_POINTS)

    assert encoding.shape == (BATCH, K, 1), encoding.shape
    assert restoration.shape == (BATCH, 3, NUM_POINTS), restoration.shape
    # bf16 MXU operands vs f32 reference math -> compare at bf16-level tolerance.
    np.testing.assert_allclose(np.asarray(encoding), np.asarray(ref_enc),
                               rtol=2e-2, atol=2e-2)
    np.testing.assert_allclose(np.asarray(restoration), np.asarray(ref_rec),
                               rtol=2e-2, atol=2e-2)
    print("KERNEL_OK")
</pallas_src>

<mosaic_0001>
module attributes {stable_mosaic.version = 11 : i64} {
  func.func @autoencoder_kernel(%arg0: memref<128x3xf32, #tpu.memory_space<vmem>>, %arg1: memref<3x64xf32, #tpu.memory_space<vmem>>, %arg2: memref<1x64xf32, #tpu.memory_space<vmem>>, %arg3: memref<64x128xbf16, #tpu.memory_space<vmem>>, %arg4: memref<1x128xf32, #tpu.memory_space<vmem>>, %arg5: memref<128x128xbf16, #tpu.memory_space<vmem>>, %arg6: memref<1x128xf32, #tpu.memory_space<vmem>>, %arg7: memref<128x256xbf16, #tpu.memory_space<vmem>>, %arg8: memref<1x256xf32, #tpu.memory_space<vmem>>, %arg9: memref<256x128xbf16, #tpu.memory_space<vmem>>, %arg10: memref<1x128xf32, #tpu.memory_space<vmem>>, %arg11: memref<128x256xbf16, #tpu.memory_space<vmem>>, %arg12: memref<1x256xf32, #tpu.memory_space<vmem>>, %arg13: memref<256x256xbf16, #tpu.memory_space<vmem>>, %arg14: memref<1x256xf32, #tpu.memory_space<vmem>>, %arg15: memref<256x256xbf16, #tpu.memory_space<vmem>>, %arg16: memref<1x256xf32, #tpu.memory_space<vmem>>, %arg17: memref<2x128xf32, #tpu.memory_space<vmem>>, %arg18: memref<2x256xf32, #tpu.memory_space<vmem>>) attributes {dimension_semantics = [], scalar_prefetch = 0 : i64, scratch_operands = 0 : i64, tpu.core_type = #tpu.core_type<tc>} {
    %c0 = arith.constant 0 : index
    %c0_0 = arith.constant 0 : index
    %0 = vector.load %arg0[%c0, %c0_0] : memref<128x3xf32, #tpu.memory_space<vmem>>, vector<128x3xf32>
    %c0_1 = arith.constant 0 : index
    %c0_2 = arith.constant 0 : index
    %1 = vector.load %arg1[%c0_1, %c0_2] : memref<3x64xf32, #tpu.memory_space<vmem>>, vector<3x64xf32>
    %2 = vector.extract_strided_slice %0 {offsets = [0, 0], sizes = [128, 1], strides = [1, 1]} : vector<128x3xf32> to vector<128x1xf32>
    %3 = vector.extract_strided_slice %1 {offsets = [0, 0], sizes = [1, 64], strides = [1, 1]} : vector<3x64xf32> to vector<1x64xf32>
    %4 = vector.broadcast %2 : vector<128x1xf32> to vector<128x64xf32>
    %5 = vector.broadcast %3 : vector<1x64xf32> to vector<128x64xf32>
    %6 = arith.mulf %4, %5 : vector<128x64xf32>
    %7 = vector.extract_strided_slice %0 {offsets = [0, 1], sizes = [128, 1], strides = [1, 1]} : vector<128x3xf32> to vector<128x1xf32>
    %8 = vector.extract_strided_slice %1 {offsets = [1, 0], sizes = [1, 64], strides = [1, 1]} : vector<3x64xf32> to vector<1x64xf32>
    %9 = vector.broadcast %7 : vector<128x1xf32> to vector<128x64xf32>
    %10 = vector.broadcast %8 : vector<1x64xf32> to vector<128x64xf32>
    %11 = arith.mulf %9, %10 : vector<128x64xf32>
    %12 = arith.addf %6, %11 : vector<128x64xf32>
    %13 = vector.extract_strided_slice %0 {offsets = [0, 2], sizes = [128, 1], strides = [1, 1]} : vector<128x3xf32> to vector<128x1xf32>
    %14 = vector.extract_strided_slice %1 {offsets = [2, 0], sizes = [1, 64], strides = [1, 1]} : vector<3x64xf32> to vector<1x64xf32>
    %15 = vector.broadcast %13 : vector<128x1xf32> to vector<128x64xf32>
    %16 = vector.broadcast %14 : vector<1x64xf32> to vector<128x64xf32>
    %17 = arith.mulf %15, %16 : vector<128x64xf32>
    %18 = arith.addf %12, %17 : vector<128x64xf32>
    %c0_3 = arith.constant 0 : index
    %c0_4 = arith.constant 0 : index
    %19 = vector.load %arg2[%c0_3, %c0_4] : memref<1x64xf32, #tpu.memory_space<vmem>>, vector<1x64xf32>
    %20 = vector.broadcast %19 : vector<1x64xf32> to vector<128x64xf32>
    %21 = arith.addf %18, %20 : vector<128x64xf32>
    %cst = arith.constant 0.000000e+00 : f32
    %22 = vector.broadcast %cst : f32 to vector<128x64xf32>
    %23 = arith.maximumf %21, %22 : vector<128x64xf32>
    %24 = arith.truncf %23 : vector<128x64xf32> to vector<128x64xbf16>
    %c0_5 = arith.constant 0 : index
    %c0_6 = arith.constant 0 : index
    %25 = vector.load %arg3[%c0_5, %c0_6] : memref<64x128xbf16, #tpu.memory_space<vmem>>, vector<64x128xbf16>
    %cst_7 = arith.constant dense<0.000000e+00> : vector<128x128xf32>
    %26 = tpu.matmul %24, %25, %cst_7 {dimension_numbers = #tpu.dot_dimension_numbers<[1], [0], [0], [1], [0, 0, 1, 1], [], []>} : vector<128x64xbf16>, vector<64x128xbf16>, vector<128x128xf32> -> vector<128x128xf32>
    %c0_8 = arith.constant 0 : index
    %c0_9 = arith.constant 0 : index
    %27 = vector.load %arg4[%c0_8, %c0_9] : memref<1x128xf32, #tpu.memory_space<vmem>>, vector<1x128xf32>
    %28 = vector.broadcast %27 : vector<1x128xf32> to vector<128x128xf32>
    %29 = arith.addf %26, %28 : vector<128x128xf32>
    %cst_10 = arith.constant 0.000000e+00 : f32
    %30 = vector.broadcast %cst_10 : f32 to vector<128x128xf32>
    %31 = arith.maximumf %29, %30 : vector<128x128xf32>
    %32 = arith.truncf %31 : vector<128x128xf32> to vector<128x128xbf16>
    %c0_11 = arith.constant 0 : index
    %c0_12 = arith.constant 0 : index
    %33 = vector.load %arg5[%c0_11, %c0_12] : memref<128x128xbf16, #tpu.memory_space<vmem>>, vector<128x128xbf16>
    %cst_13 = arith.constant dense<0.000000e+00> : vector<128x128xf32>
    %34 = tpu.matmul %32, %33, %cst_13 {dimension_numbers = #tpu.dot_dimension_numbers<[1], [0], [0], [1], [0, 0, 1, 1], [], []>} : vector<128x128xbf16>, vector<128x128xbf16>, vector<128x128xf32> -> vector<128x128xf32>
    %c0_14 = arith.constant 0 : index
    %c0_15 = arith.constant 0 : index
    %35 = vector.load %arg6[%c0_14, %c0_15] : memref<1x128xf32, #tpu.memory_space<vmem>>, vector<1x128xf32>
    %36 = vector.broadcast %35 : vector<1x128xf32> to vector<128x128xf32>
    %37 = arith.addf %34, %36 : vector<128x128xf32>
    %cst_16 = arith.constant 0.000000e+00 : f32
    %38 = vector.broadcast %cst_16 : f32 to vector<128x128xf32>
    %39 = arith.maximumf %37, %38 : vector<128x128xf32>
    %40 = arith.truncf %39 : vector<128x128xf32> to vector<128x128xbf16>
    %c0_17 = arith.constant 0 : index
    %c0_18 = arith.constant 0 : index
    %41 = vector.load %arg7[%c0_17, %c0_18] : memref<128x256xbf16, #tpu.memory_space<vmem>>, vector<128x256xbf16>
    %cst_19 = arith.constant dense<0.000000e+00> : vector<128x256xf32>
    %42 = tpu.matmul %40, %41, %cst_19 {dimension_numbers = #tpu.dot_dimension_numbers<[1], [0], [0], [1], [0, 0, 1, 1], [], []>} : vector<128x128xbf16>, vector<128x256xbf16>, vector<128x256xf32> -> vector<128x256xf32>
    %c0_20 = arith.constant 0 : index
    %c0_21 = arith.constant 0 : index
    %43 = vector.load %arg8[%c0_20, %c0_21] : memref<1x256xf32, #tpu.memory_space<vmem>>, vector<1x256xf32>
    %44 = vector.broadcast %43 : vector<1x256xf32> to vector<128x256xf32>
    %45 = arith.addf %42, %44 : vector<128x256xf32>
    %cst_22 = arith.constant 0.000000e+00 : f32
    %46 = vector.broadcast %cst_22 : f32 to vector<128x256xf32>
    %47 = arith.maximumf %45, %46 : vector<128x256xf32>
    %48 = arith.truncf %47 : vector<128x256xf32> to vector<128x256xbf16>
    %c0_23 = arith.constant 0 : index
    %c0_24 = arith.constant 0 : index
    %49 = vector.load %arg9[%c0_23, %c0_24] : memref<256x128xbf16, #tpu.memory_space<vmem>>, vector<256x128xbf16>
    %cst_25 = arith.constant dense<0.000000e+00> : vector<128x128xf32>
    %50 = tpu.matmul %48, %49, %cst_25 {dimension_numbers = #tpu.dot_dimension_numbers<[1], [0], [0], [1], [0, 0, 1, 1], [], []>} : vector<128x256xbf16>, vector<256x128xbf16>, vector<128x128xf32> -> vector<128x128xf32>
    %c0_26 = arith.constant 0 : index
    %c0_27 = arith.constant 0 : index
    %51 = vector.load %arg10[%c0_26, %c0_27] : memref<1x128xf32, #tpu.memory_space<vmem>>, vector<1x128xf32>
    %52 = vector.broadcast %51 : vector<1x128xf32> to vector<128x128xf32>
    %53 = arith.addf %50, %52 : vector<128x128xf32>
    %cst_28 = arith.constant 0.000000e+00 : f32
    %54 = vector.broadcast %cst_28 : f32 to vector<128x128xf32>
    %55 = arith.maximumf %53, %54 : vector<128x128xf32>
    %56 = vector.shape_cast %55 : vector<128x128xf32> to vector<2x64x128xf32>
    %cst_29 = arith.constant dense<0xFF800000> : vector<2x128xf32>
    %57 = vector.multi_reduction <maximumf>, %56, %cst_29 [1] : vector<2x64x128xf32> to vector<2x128xf32>
    %c0_30 = arith.constant 0 : index
    %c0_31 = arith.constant 0 : index
    %58 = vector.load %arg17[%c0_30, %c0_31] : memref<2x128xf32, #tpu.memory_space<vmem>>, vector<2x128xf32>
    tpu.vector_store %arg17[%c0_30, %c0_31], %57 {strides = array<i32>} : memref<2x128xf32, #tpu.memory_space<vmem>>, vector<2x128xf32>,
    %59 = arith.truncf %57 : vector<2x128xf32> to vector<2x128xbf16>
    %c0_32 = arith.constant 0 : index
    %c0_33 = arith.constant 0 : index
    %60 = vector.load %arg11[%c0_32, %c0_33] : memref<128x256xbf16, #tpu.memory_space<vmem>>, vector<128x256xbf16>
    %cst_34 = arith.constant dense<0.000000e+00> : vector<2x256xf32>
    %61 = tpu.matmul %59, %60, %cst_34 {dimension_numbers = #tpu.dot_dimension_numbers<[1], [0], [0], [1], [0, 0, 1, 1], [], []>} : vector<2x128xbf16>, vector<128x256xbf16>, vector<2x256xf32> -> vector<2x256xf32>
    %c0_35 = arith.constant 0 : index
    %c0_36 = arith.constant 0 : index
    %62 = vector.load %arg12[%c0_35, %c0_36] : memref<1x256xf32, #tpu.memory_space<vmem>>, vector<1x256xf32>
    %63 = vector.broadcast %62 : vector<1x256xf32> to vector<2x256xf32>
    %64 = arith.addf %61, %63 : vector<2x256xf32>
    %cst_37 = arith.constant 0.000000e+00 : f32
    %65 = vector.broadcast %cst_37 : f32 to vector<2x256xf32>
    %66 = arith.maximumf %64, %65 : vector<2x256xf32>
    %67 = arith.truncf %66 : vector<2x256xf32> to vector<2x256xbf16>
    %c0_38 = arith.constant 0 : index
    %c0_39 = arith.constant 0 : index
    %68 = vector.load %arg13[%c0_38, %c0_39] : memref<256x256xbf16, #tpu.memory_space<vmem>>, vector<256x256xbf16>
    %cst_40 = arith.constant dense<0.000000e+00> : vector<2x256xf32>
    %69 = tpu.matmul %67, %68, %cst_40 {dimension_numbers = #tpu.dot_dimension_numbers<[1], [0], [0], [1], [0, 0, 1, 1], [], []>} : vector<2x256xbf16>, vector<256x256xbf16>, vector<2x256xf32> -> vector<2x256xf32>
    %c0_41 = arith.constant 0 : index
    %c0_42 = arith.constant 0 : index
    %70 = vector.load %arg14[%c0_41, %c0_42] : memref<1x256xf32, #tpu.memory_space<vmem>>, vector<1x256xf32>
    %71 = vector.broadcast %70 : vector<1x256xf32> to vector<2x256xf32>
    %72 = arith.addf %69, %71 : vector<2x256xf32>
    %cst_43 = arith.constant 0.000000e+00 : f32
    %73 = vector.broadcast %cst_43 : f32 to vector<2x256xf32>
    %74 = arith.maximumf %72, %73 : vector<2x256xf32>
    %75 = arith.truncf %74 : vector<2x256xf32> to vector<2x256xbf16>
    %c0_44 = arith.constant 0 : index
    %c0_45 = arith.constant 0 : index
    %76 = vector.load %arg15[%c0_44, %c0_45] : memref<256x256xbf16, #tpu.memory_space<vmem>>, vector<256x256xbf16>
    %cst_46 = arith.constant dense<0.000000e+00> : vector<2x256xf32>
    %77 = tpu.matmul %75, %76, %cst_46 {dimension_numbers = #tpu.dot_dimension_numbers<[1], [0], [0], [1], [0, 0, 1, 1], [], []>} : vector<2x256xbf16>, vector<256x256xbf16>, vector<2x256xf32> -> vector<2x256xf32>
    %c0_47 = arith.constant 0 : index
    %c0_48 = arith.constant 0 : index
    %78 = vector.load %arg16[%c0_47, %c0_48] : memref<1x256xf32, #tpu.memory_space<vmem>>, vector<1x256xf32>
    %79 = vector.broadcast %78 : vector<1x256xf32> to vector<2x256xf32>
    %80 = arith.addf %77, %79 : vector<2x256xf32>
    %c0_49 = arith.constant 0 : index
    %c0_50 = arith.constant 0 : index
    %81 = vector.load %arg18[%c0_49, %c0_50] : memref<2x256xf32, #tpu.memory_space<vmem>>, vector<2x256xf32>
    tpu.vector_store %arg18[%c0_49, %c0_50], %80 {strides = array<i32>} : memref<2x256xf32, #tpu.memory_space<vmem>>, vector<2x256xf32>,
    return
  }
}

</mosaic_0001>

<bundles_post_ra>
// kernel: tpu_custom_call.1
= control target key start
LH: loop header
LB: loop body
LE: loop exit
PB: predicated region body
PF: predicated region fallthrough
CT: control target
= control target key end

     0   :  { %s3413_s0 = inlined_call_operand.vmem [shape: f32[128,3], index: 0, kind: input, shape index: {}]   ;;  %s3414_s1 = inlined_call_operand.vmem [shape: f32[3,64], index: 1, kind: input, shape index: {}]   ;;  %s3415_s2 = inlined_call_operand.vmem [shape: f32[1,64], index: 2, kind: input, shape index: {}]   ;;  %s3416_s3 = inlined_call_operand.hbm [shape: bf16[64,128], index: 3, kind: input, shape index: {}]   ;;  %s3417_s4 = inlined_call_operand.vmem [shape: f32[1,128], index: 4, kind: input, shape index: {}]   ;;  %s3418_s5 = inlined_call_operand.hbm [shape: bf16[128,128], index: 5, kind: input, shape index: {}]   ;;  %s3419_s6 = inlined_call_operand.vmem [shape: f32[1,128], index: 6, kind: input, shape index: {}]   ;;  %s3420_s7 = inlined_call_operand.vmem [shape: bf16[128,256], index: 7, kind: input, shape index: {}]   ;;  %s3421_s8 = inlined_call_operand.vmem [shape: f32[1,256], index: 8, kind: input, shape index: {}]   ;;  %s3422_s9 = inlined_call_operand.hbm [shape: bf16[256,128], index: 9, kind: input, shape index: {}]   ;;  %s3423_s10 = inlined_call_operand.vmem [shape: f32[1,128], index: 10, kind: input, shape index: {}]   ;;  %s3424_s11 = inlined_call_operand.hbm [shape: bf16[128,256], index: 11, kind: input, shape index: {}]   ;;  %s3425_s12 = inlined_call_operand.vmem [shape: f32[1,256], index: 12, kind: input, shape index: {}]   ;;  %s3426_s13 = inlined_call_operand.hbm [shape: bf16[256,256], index: 13, kind: input, shape index: {}]   ;;  %s3427_s14 = inlined_call_operand.vmem [shape: f32[1,256], index: 14, kind: input, shape index: {}]   ;;  %s3428_s15 = inlined_call_operand.hbm [shape: bf16[256,256], index: 15, kind: input, shape index: {}]   ;;  %s3429_s16 = inlined_call_operand.vmem [shape: f32[1,256], index: 16, kind: input, shape index: {}]   ;;  %s3430_s17 = inlined_call_operand.hbm [shape: f32[2,128], index: 17, kind: output, shape index: {0}]   ;;  %s3431_s18 = inlined_call_operand.hbm [shape: f32[2,256], index: 18, kind: output, shape index: {1}]  }
   0x1   :  { %3437 = sst [smem:[#allocation22_spill]] %s3413_s0 }
   0x2   :  { %3438 = sst [smem:[#allocation23_spill]] %s3414_s1 }
   0x3   :  { %3439 = sst [smem:[#allocation24_spill]] %s3415_s2 }
   0x4   :  { %24 = vsyncpa [#allocation3], 0 }
   0x5   :  { %25 = vsyncpa [#allocation6], 0 }
   0x6   :  { %26 = vsyncpa [#allocation9], 0 }
   0x7   :  { %27 = vsyncpa [#allocation12], 0 }
   0x8   :  { %28 = vsyncpa [#allocation4], 0 }
   0x9   :  { %29 = vsyncpa [#allocation15], 0  ;;  %s2818_s27 = smov [#allocation5]   ;;  %s2819_s29 = smov [#allocation8]  }
   0xa   :  { %s55_s28 = sshll.u32 %s2818_s27, 4  ;;  %s87_s30 = sshll.u32 %s2819_s29, 4  ;;  %s56_s28 = int_to_ptr.vmem [resolvable:$true] %s55_s28  ;;  %s2928_s30 = int_to_ptr.vmem [resolvable:$true] %s87_s30 }
   0xb   :  { %s2630_s1 = scalar_lea.hbm %s3418_s5, 1024 }
   0xc   :  { %p2631_p0 = scmp.ne.s32.totalorder %s3418_s5, %s2630_s1  ;;  %p2634_p1 = scmp.lt.u32.totalorder %s2630_s1, %s3418_s5 }
   0xe   :  { %p2636_p2 = pnand %p2634_p1, %p2631_p0 }
  0x10   :  { %2639 = shalt.err (!%p2636_p2)
}
  0x11   :  { %s2640_s23 = scalar_lea.vmem %s56_s28, 1024  ;;  %p2645_p4 = scmp.lt.s32.totalorder %s56_s28, %s56_s28 }
  0x12   :  { %p2641_p3 = scmp.ne.s32.totalorder %s56_s28, %s2640_s23  ;;  %p2646_p5 = scmp.lt.s32.totalorder %s2640_s23, %s2640_s23 }
  0x14   :  { %p2647_p6 = por %p2646_p5, %p2645_p4 }
  0x16   :  { %p2648_p7 = pnand %p2647_p6, %p2641_p3 }
  0x18   :  { %2651 = shalt.err (!%p2648_p7)
}
  0x19   :  { %s3433_s24 = smov 64   ;;  %s3435_s25 = smov 4  }
  0x1a   :  { %61 = dma.hbm_to_vmem [thread:$0]  %s3418_s5, 1024, %s56_s28, [#allocation6], %s3433_s24, %s3433_s24, %s3435_s25  }
  0x1b   :  { %s2652_s19 = scalar_lea.hbm %s3424_s11, 2048 }
  0x1c   :  { %p2653_p8 = scmp.ne.s32.totalorder %s3424_s11, %s2652_s19  ;;  %p2656_p9 = scmp.lt.u32.totalorder %s2652_s19, %s3424_s11 }
  0x1e   :  { %p2658_p10 = pnand %p2656_p9, %p2653_p8 }
  0x20   :  { %2661 = shalt.err (!%p2658_p10)
}
  0x21   :  { %s2662_s2 = scalar_lea.vmem %s2928_s30, 2048  ;;  %p2667_p12 = scmp.lt.s32.totalorder %s2928_s30, %s2928_s30 }
  0x22   :  { %p2663_p11 = scmp.ne.s32.totalorder %s2928_s30, %s2662_s2  ;;  %p2668_p13 = scmp.lt.s32.totalorder %s2662_s2, %s2662_s2 }
  0x24   :  { %p2669_p0 = por %p2668_p13, %p2667_p12 }
  0x26   :  { %p2670_p1 = pnand %p2669_p0, %p2663_p11 }
  0x28   :  { %2673 = shalt.err (!%p2670_p1)
}
  0x29   :  { %s2822_s5 = smov 128   ;;  %s2823_s28 = smov 8  }
  0x2a   :  { %93 = dma.hbm_to_vmem [thread:$0]  %s3424_s11, 2048, %s2928_s30, [#allocation9], %s2822_s5, %s2822_s5, %s2823_s28  }
  0x2b   :  { %s2824_s27 = smov [#allocation2]   ;;  %s2825_s0 = smov [#allocation7]  }
  0x2c   :  { %s41_s29 = sshll.u32 %s2824_s27, 4  ;;  %s73_s19 = sshll.u32 %s2825_s0, 4  ;;  %s42_s29 = int_to_ptr.vmem [resolvable:$true] %s41_s29  ;;  %s2965_s19 = int_to_ptr.vmem [resolvable:$true] %s73_s19 }
  0x2d   :  { %s2674_s21 = scalar_lea.hbm %s3416_s3, 512 }
  0x2e   :  { %p2675_p2 = scmp.ne.s32.totalorder %s3416_s3, %s2674_s21  ;;  %p2678_p3 = scmp.lt.u32.totalorder %s2674_s21, %s3416_s3 }
  0x30   :  { %p2680_p4 = pnand %p2678_p3, %p2675_p2 }
  0x32   :  { %2683 = shalt.err (!%p2680_p4)
}
  0x33   :  { %s2684_s11 = scalar_lea.vmem %s42_s29, 512  ;;  %p2689_p6 = scmp.lt.s32.totalorder %s42_s29, %s42_s29 }
  0x34   :  { %p2685_p5 = scmp.ne.s32.totalorder %s42_s29, %s2684_s11  ;;  %p2690_p7 = scmp.lt.s32.totalorder %s2684_s11, %s2684_s11 }
  0x36   :  { %p2691_p8 = por %p2690_p7, %p2689_p6 }
  0x38   :  { %p2692_p9 = pnand %p2691_p8, %p2685_p5 }
  0x3a   :  { %2695 = shalt.err (!%p2692_p9)
}
  0x3b   :  { %s3440_s30 = smov 4   ;;  %s3441_s23 = smov 64  }
  0x3c   :  { %47 = dma.hbm_to_vmem [thread:$0]  %s3416_s3, 512, %s42_s29, [#allocation3], %s3441_s23, %s3441_s23, %s3440_s30  }
  0x3d   :  { %s2696_s24 = scalar_lea.hbm %s3422_s9, 2048 }
  0x3e   :  { %p2697_p10 = scmp.ne.s32.totalorder %s3422_s9, %s2696_s24  ;;  %p2700_p11 = scmp.lt.u32.totalorder %s2696_s24, %s3422_s9 }
  0x40   :  { %p2702_p12 = pnand %p2700_p11, %p2697_p10 }
  0x42   :  { %2705 = shalt.err (!%p2702_p12)
}
  0x43   :  { %s2706_s2 = scalar_lea.vmem %s2965_s19, 2048  ;;  %p2711_p0 = scmp.lt.s32.totalorder %s2965_s19, %s2965_s19 }
  0x44   :  { %p2707_p13 = scmp.ne.s32.totalorder %s2965_s19, %s2706_s2  ;;  %p2712_p1 = scmp.lt.s32.totalorder %s2706_s2, %s2706_s2 }
  0x46   :  { %p2713_p2 = por %p2712_p1, %p2711_p0 }
  0x48   :  { %p2714_p3 = pnand %p2713_p2, %p2707_p13 }
  0x4a   :  { %2717 = shalt.err (!%p2714_p3)
}
  0x4b   :  { %79 = dma.hbm_to_vmem [thread:$0]  %s3422_s9, 2048, %s2965_s19, [#allocation6], %s3441_s23, %s3441_s23, %s3440_s30  }
  0x4c   :  { %s2826_s11 = smov [#allocation10]   ;;  %s2827_s27 = smov [#allocation11]  }
  0x4d   :  { %s101_s26 = sshll.u32 %s2826_s11, 4  ;;  %s115_s0 = sshll.u32 %s2827_s27, 4  ;;  %s102_s26 = int_to_ptr.vmem [resolvable:$true] %s101_s26  ;;  %s3002_s0 = int_to_ptr.vmem [resolvable:$true] %s115_s0 }
  0x4e   :  { %s2718_s25 = scalar_lea.hbm %s3426_s13, 4096 }
  0x4f   :  { %p2719_p4 = scmp.ne.s32.totalorder %s3426_s13, %s2718_s25  ;;  %p2722_p5 = scmp.lt.u32.totalorder %s2718_s25, %s3426_s13 }
  0x51   :  { %p2724_p6 = pnand %p2722_p5, %p2719_p4 }
  0x53   :  { %2727 = shalt.err (!%p2724_p6)
}
  0x54   :  { %s2728_s9 = scalar_lea.vmem %s102_s26, 4096  ;;  %p2733_p8 = scmp.lt.s32.totalorder %s102_s26, %s102_s26 }
  0x55   :  { %p2729_p7 = scmp.ne.s32.totalorder %s102_s26, %s2728_s9  ;;  %p2734_p9 = scmp.lt.s32.totalorder %s2728_s9, %s2728_s9 }
  0x57   :  { %p2735_p10 = por %p2734_p9, %p2733_p8 }
  0x59   :  { %p2736_p11 = pnand %p2735_p10, %p2729_p7 }
  0x5b   :  { %2739 = shalt.err (!%p2736_p11)
}
  0x5c   :  { %107 = dma.hbm_to_vmem [thread:$0]  %s3426_s13, 4096, %s102_s26, [#allocation9], %s2822_s5, %s2822_s5, %s2823_s28  }
  0x5d   :  { %s2740_s29 = scalar_lea.hbm %s3428_s15, 4096 }
  0x5e   :  { %p2741_p12 = scmp.ne.s32.totalorder %s3428_s15, %s2740_s29  ;;  %p2744_p13 = scmp.lt.u32.totalorder %s2740_s29, %s3428_s15 }
  0x60   :  { %p2746_p0 = pnand %p2744_p13, %p2741_p12 }
  0x62   :  { %2749 = shalt.err (!%p2746_p0)
}
  0x63   :  { %s2750_s25 = scalar_lea.vmem %s3002_s0, 4096  ;;  %p2755_p2 = scmp.lt.s32.totalorder %s3002_s0, %s3002_s0 }
  0x64   :  { %p2751_p1 = scmp.ne.s32.totalorder %s3002_s0, %s2750_s25  ;;  %p2756_p3 = scmp.lt.s32.totalorder %s2750_s25, %s2750_s25 }
  0x66   :  { %p2757_p4 = por %p2756_p3, %p2755_p2 }
  0x68   :  { %p2758_p5 = pnand %p2757_p4, %p2751_p1 }
  0x6a   :  { %2761 = shalt.err (!%p2758_p5)
}
  0x6b   :  { %121 = dma.hbm_to_vmem [thread:$0]  %s3428_s15, 4096, %s3002_s0, [#allocation12], %s2822_s5, %s2822_s5, %s2823_s28  }
  0x6c   :  { %2806 = dma.done.wait [#allocation3], 512  }
  0x6d   :  { %2807 = vsyncadd [#allocation3], 4294966784 }
  0x6e   :  { %2808 = dma.done.wait [#allocation6], 3072  }
  0x6f   :  { %2809 = vsyncadd [#allocation6], 4294964224 }
  0x70   :  { %2810 = dma.done.wait [#allocation9], 6144  }
  0x71   :  { %2811 = vsyncadd [#allocation9], 4294961152 }
  0x72   :  { %2812 = dma.done.wait [#allocation12], 4096  }
  0x73   :  { %2813 = vsyncadd [#allocation12], 4294963200  ;;  %v2828_v0 = vmov 1   ;;  %v2829_v1 = vmov 0   ;;  %s3442_s22 = sld [smem:[#allocation22_spill]]  ;;  %v2830_v8 = vmov 2   ;;  %v240_v25 = vlaneseq }
  0x74   :  { %2434 = vset.pattern.permute.xlu1 %v2828_v0  ;;  %2433 = vset.pattern.permute.xlu0 %v2829_v1  ;;  %v2458_v9 = vld [vmem:[#allocation2] sm:$0xff]   ;;  %v2459_v10 = vld [vmem:[#allocation2 + $0x8] sm:$0xff]   ;;  %v2460_v12 = vld [vmem:[#allocation2 + $0x10] sm:$0xff]   ;;  %s3443_s11 = sld [smem:[#allocation23_spill]]  ;;  %s3444_s24 = sld [smem:[#allocation24_spill]]  ;;  %vm546_vm0 = vcmask 523264  }
  0x75   :  { %1024 = vmatprep.mubr.bf16.mxu0 %v2829_v1  ;;  %2362 = vmatprep.subr.bf16.mxu1 %v2458_v9  ;;  %v2461_v14 = vld [vmem:[#allocation2 + $0x18] sm:$0xff]   ;;  %v241_v28 = vshrl.u32 %v240_v25, 7  ;;  %v2462_v36 = vld [vmem:[#allocation5] sm:$0xff]   ;;  %vm1429_vm1 = vcmask 1041409  }
  0x76   :  { %2363 = vmatpush3.bf16.msra.mxu1 %v2458_v9 }
  0x77   :  { %2364 = vmatprep.subr.bf16.mxu1 %v2459_v10  ;;  %v3113_v31 = vsub.s32 1, %v241_v28  ;;  %v3115_v32 = vsub.s32 0, %v241_v28  ;;  %v426_v35 = vsub.s32 2, %v241_v28 }
  0x79   :  { %v143_v2 = vld [vmem:[%s3442_s22] sm:$0xff]  ;;  %v144_v3 = vld [vmem:[%s3442_s22 + $0x8] sm:$0xff]  ;;  %v145_v4 = vld [vmem:[%s3442_s22 + $0x10] sm:$0xff] }
  0x7a   :  { %261 = vperm.xlu1 %2434, %v143_v2   ;;  %162 = vperm.xlu0 %2433, %v143_v2   ;;  %v146_v5 = vld [vmem:[%s3442_s22 + $0x18] sm:$0xff]  ;;  %v148_v6 = vld [vmem:[%s3442_s22 + $0x28] sm:$0xff]  ;;  %v149_v7 = vld [vmem:[%s3442_s22 + $0x30] sm:$0xff] }
  0x7b   :  { %v147_v11 = vld [vmem:[%s3442_s22 + $0x20] sm:$0xff]  ;;  %2365 = vmatpush3.bf16.msra.mxu1 %v2459_v10  ;;  %v150_v13 = vld [vmem:[%s3442_s22 + $0x38] sm:$0xff]  ;;  %v152_v15 = vld [vmem:[%s3442_s22 + $0x48] sm:$0xff] }
  0x7c   :  { %2366 = vmatprep.subr.bf16.mxu1 %v2460_v12  ;;  %v153_v16 = vld [vmem:[%s3442_s22 + $0x50] sm:$0xff]  ;;  %v155_v17 = vld [vmem:[%s3442_s22 + $0x60] sm:$0xff]  ;;  %v156_v18 = vld [vmem:[%s3442_s22 + $0x68] sm:$0xff] }
  0x7d   :  { %v151_v19 = vld [vmem:[%s3442_s22 + $0x40] sm:$0xff]  ;;  %v157_v20 = vld [vmem:[%s3442_s22 + $0x70] sm:$0xff]  ;;  %v154_v21 = vld [vmem:[%s3442_s22 + $0x58] sm:$0xff] }
  0x7e   :  { %265 = vperm.xlu1 %2434, %v144_v3   ;;  %167 = vperm.xlu0 %2433, %v144_v3   ;;  %v158_v22 = vld [vmem:[%s3442_s22 + $0x78] sm:$0xff]  ;;  %v159_v33 = vld [vmem:[%s3443_s11] sm:$0x7]  ;;  %s2831_s11 = smov [#allocation13]  }
  0x7f   :  { %2367 = vmatpush3.bf16.msra.mxu1 %v2460_v12  ;;  %v3121_v38 = vrot.slane %v159_v33, %v3113_v31  ;;  %v3124_v39 = vrot.slane %v159_v33, %v3115_v32  ;;  %v3128_v41 = vrot.slane %v159_v33, %v426_v35  ;;  %v3145_v58 = vld [vmem:[%s3444_s24] ss:$0 sm:$0xff]  ;;  %v2467_v35 = vld [vmem:[#allocation5 + $0x28] sm:$0xff]   ;;  %s2107_s27 = sshll.u32 %s2831_s11, 4  ;;  %s2108_s27 = int_to_ptr.vmem [resolvable:$true] %s2107_s27 }
  0x80   :  { %2368 = vmatprep.subr.bf16.mxu1 %v2461_v14  ;;  %p2767_p7 = scmp.lt.s32.totalorder %s2108_s27, %s2108_s27 }
  0x82   :  { %2435 = vset.pattern.permute.xlu1 %v2829_v1  ;;  %172 = vperm.xlu0 %2433, %v145_v4  }
  0x83   :  { %177 = vperm.xlu1 %2435, %v146_v5   ;;  %2369 = vmatpush3.bf16.msra.mxu1 %v2461_v14 }
  0x84   :  { %2386 = vmatprep.subr.bf16.mxu1 %v2462_v36 }
  0x86   :  { %2436 = vset.pattern.permute.xlu0 %v2828_v0 }
  0x87   :  { %2437 = vset.pattern.permute.xlu1 %v2828_v0  ;;  %269 = vperm.xlu0 %2436, %v145_v4  }
  0x88   :  { %273 = vperm.xlu1 %2437, %v146_v5  }
  0x8b   :  { %281 = vperm.xlu0 %2436, %v148_v6  }
  0x8c   :  { %2438 = vset.pattern.permute.xlu1 %v2830_v8 }
  0x8d   :  { %361 = vperm.xlu1 %2438, %v143_v2  }
  0x8f   :  { %285 = vperm.xlu0 %2436, %v149_v7  }
  0x91   :  { %369 = vperm.xlu1 %2438, %v145_v4  }
  0x93   :  { %2442 = vset.pattern.permute.xlu0 %v2830_v8 }
  0x94   :  { %365 = vperm.xlu0 %2442, %v144_v3  }
  0x95   :  { %373 = vperm.xlu1 %2438, %v146_v5  }
  0x98   :  { %377 = vperm.xlu0 %2442, %v147_v11  }
  0x99   :  { %2439 = vset.pattern.permute.xlu1 %v2829_v1 }
  0x9a   :  { %187 = vperm.xlu1 %2439, %v148_v6  }
  0x9c   :  { %389 = vperm.xlu0 %2442, %v150_v13  }
  0x9e   :  { %2440 = vset.pattern.permute.xlu1 %v2828_v0 }
  0x9f   :  { %277 = vperm.xlu1 %2440, %v147_v11  }
  0xa0   :  { %397 = vperm.xlu0 %2442, %v152_v15  }
  0xa3   :  { %2441 = vset.pattern.permute.xlu1 %v2829_v1 }
  0xa4   :  { %192 = vperm.xlu1 %2441, %v149_v7   ;;  %2450 = vset.pattern.permute.xlu0 %v2829_v1 }
  0xa5   :  { %182 = vperm.xlu0 %2450, %v147_v11  }
  0xa8   :  { %197 = vperm.xlu1 %2441, %v150_v13  }
  0xa9   :  { %207 = vperm.xlu0 %2450, %v152_v15  }
  0xac   :  { %2443 = vset.pattern.permute.xlu1 %v2828_v0 }
  0xad   :  { %289 = vperm.xlu1 %2443, %v150_v13   ;;  %212 = vperm.xlu0 %2450, %v153_v16  }
  0xb1   :  { %2444 = vset.pattern.permute.xlu1 %v2830_v8  ;;  %222 = vperm.xlu0 %2450, %v155_v17  }
  0xb2   :  { %381 = vperm.xlu1 %2444, %v148_v6  }
  0xb5   :  { %2451 = vset.pattern.permute.xlu0 %v2828_v0 }
  0xb6   :  { %385 = vperm.xlu1 %2444, %v149_v7   ;;  %301 = vperm.xlu0 %2451, %v153_v16  }
  0xba   :  { %2445 = vset.pattern.permute.xlu1 %v2829_v1  ;;  %313 = vperm.xlu0 %2451, %v156_v18  }
  0xbb   :  { %202 = vperm.xlu1 %2445, %v151_v19  }
  0xbe   :  { %317 = vperm.xlu0 %2451, %v157_v20  }
  0xbf   :  { %2446 = vset.pattern.permute.xlu1 %v2828_v0 }
  0xc0   :  { %293 = vperm.xlu1 %2446, %v151_v19  }
  0xc2   :  { %2456 = vset.pattern.permute.xlu0 %v2830_v8 }
  0xc3   :  { %409 = vperm.xlu0 %2456, %v155_v17  }
  0xc4   :  { %297 = vperm.xlu1 %2446, %v152_v15  }
  0xc7   :  { %421 = vperm.xlu0 %2456, %v158_v22  }
  0xc8   :  { %2447 = vset.pattern.permute.xlu1 %v2829_v1 }
  0xc9   :  { %217 = vperm.xlu1 %2447, %v154_v21  }
  0xcd   :  { %2448 = vset.pattern.permute.xlu1 %v2828_v0 }
  0xce   :  { %305 = vperm.xlu1 %2448, %v154_v21  }
  0xd2   :  { %2449 = vset.pattern.permute.xlu1 %v2830_v8 }
  0xd3   :  { %393 = vperm.xlu1 %2449, %v151_v19  }
  0xd7   :  { %401 = vperm.xlu1 %2449, %v153_v16  }
  0xdb   :  { %405 = vperm.xlu1 %2449, %v154_v21   ;;  %v2464_v21 = vld [vmem:[#allocation5 + $0x10] sm:$0xff]  }
  0xdf   :  { %2452 = vset.pattern.permute.xlu1 %v2829_v1 }
  0xe0   :  { %227 = vperm.xlu1 %2452, %v156_v18  }
  0xe4   :  { %2453 = vset.pattern.permute.xlu1 %v2828_v0 }
  0xe5   :  { %309 = vperm.xlu1 %2453, %v155_v17  }
  0xe9   :  { %2454 = vset.pattern.permute.xlu1 %v2829_v1 }
  0xea   :  { %232 = vperm.xlu1 %2454, %v157_v20  }
  0xee   :  { %237 = vperm.xlu1 %2454, %v158_v22  }
  0xf2   :  { %2455 = vset.pattern.permute.xlu1 %v2828_v0 }
  0xf3   :  { %321 = vperm.xlu1 %2455, %v158_v22  }
  0xf7   :  { %2457 = vset.pattern.permute.xlu1 %v2830_v8 }
  0xf8   :  { %413 = vperm.xlu1 %2457, %v156_v18   ;;  %v2463_v18 = vld [vmem:[#allocation5 + $0x8] sm:$0xff]  }
  0xf9   :  { %v262_v23 = vpop.permute.xlu1 %261  ;;  %v163_v24 = vpop.permute.xlu0 %162 }
  0xfa   :  { %v328_v44 = vmul.f32 %v3121_v38, %v262_v23  ;;  %v244_v45 = vmul.f32 %v3124_v39, %v163_v24  ;;  %v2465_v24 = vld [vmem:[#allocation5 + $0x18] sm:$0xff]  }
  0xfc   :  { %417 = vperm.xlu1 %2457, %v157_v20   ;;  %v344_v50 = vadd.f32 %v328_v44, %v244_v45 }
  0xfd   :  { %v266_v26 = vpop.permute.xlu1 %265  ;;  %v168_v27 = vpop.permute.xlu0 %167 }
  0xfe   :  { %v329_v51 = vmul.f32 %v3121_v38, %v266_v26  ;;  %v245_v52 = vmul.f32 %v3124_v39, %v168_v27  ;;  %v2466_v27 = vld [vmem:[#allocation5 + $0x20] sm:$0xff]  }
 0x100   :  { %v345_v61 = vadd.f32 %v329_v51, %v245_v52 }
 0x101   :  { %v173_v29 = vpop.permute.xlu0 %172 }
 0x102   :  { %v178_v30 = vpop.permute.xlu1 %177  ;;  %v246_v42 = vmul.f32 %v3124_v39, %v173_v29 }
 0x103   :  { %v247_v57 = vmul.f32 %v3124_v39, %v178_v30 }
 0x106   :  { %v270_v34 = vpop.permute.xlu0 %269 }
 0x107   :  { %v274_v37 = vpop.permute.xlu1 %273  ;;  %v330_v43 = vmul.f32 %v3121_v38, %v270_v34 }
 0x108   :  { %v331_v54 = vmul.f32 %v3121_v38, %v274_v37 }
 0x109   :  { %v346_v49 = vadd.f32 %v330_v43, %v246_v42 }
 0x10a   :  { %v3126_v40 = vpop.permute.xlu0 %281  ;;  %v347_v0 = vadd.f32 %v331_v54, %v247_v57 }
 0x10c   :  { %v362_v46 = vpop.permute.xlu1 %361 }
 0x10d   :  { %v428_v47 = vmul.f32 %v3128_v41, %v362_v46 }
 0x10e   :  { %v3135_v48 = vpop.permute.xlu0 %285 }
 0x10f   :  { %v444_v56 = vadd.f32 %v428_v47, %v344_v50  ;;  %v334_v47 = vmul.f32 %v3121_v38, %v3135_v48 }
 0x110   :  { %v370_v53 = vpop.permute.xlu1 %369 }
 0x111   :  { %v430_v55 = vmul.f32 %v3128_v41, %v370_v53  ;;  %v467_v4 = vadd.f32 %v3145_v58, %v444_v56 }
 0x113   :  { %v446_v59 = vadd.f32 %v430_v55, %v346_v49  ;;  %v366_v60 = vpop.permute.xlu0 %365  ;;  %v483_v11 = vmax.f32 %v467_v4, 0.0 }
 0x114   :  { %v429_v62 = vmul.f32 %v3128_v41, %v366_v60  ;;  %v374_v63 = vpop.permute.xlu1 %373 }
 0x115   :  { %v431_v2 = vmul.f32 %v3128_v41, %v374_v63  ;;  %v469_v5 = vadd.f32 %v3145_v58, %v446_v59 }
 0x116   :  { %v445_v3 = vadd.f32 %v429_v62, %v345_v61 }
 0x117   :  { %v447_v6 = vadd.f32 %v431_v2, %v347_v0  ;;  %v378_v7 = vpop.permute.xlu0 %377  ;;  %v485_v13 = vmax.f32 %v469_v5, 0.0 }
 0x118   :  { %v468_v8 = vadd.f32 %v3145_v58, %v445_v3  ;;  %v432_v29 = vmul.f32 %v3128_v41, %v378_v7 }
 0x119   :  { %v470_v9 = vadd.f32 %v3145_v58, %v447_v6  ;;  %v188_v10 = vpop.permute.xlu1 %187 }
 0x11a   :  { %v484_v12 = vmax.f32 %v468_v8, 0.0  ;;  %v249_v37 = vmul.f32 %v3124_v39, %v188_v10 }
 0x11b   :  { %v486_v14 = vmax.f32 %v470_v9, 0.0  ;;  %v390_v15 = vpop.permute.xlu0 %389 }
 0x11c   :  { %v499_v16 = vpack.c.bf16 %v484_v12, %v483_v11  ;;  %v435_v43 = vmul.f32 %v3128_v41, %v390_v15 }
 0x11d   :  { %v500_v17 = vpack.c.bf16 %v486_v14, %v485_v13 }
 0x11e   :  { %v278_v19 = vpop.permute.xlu1 %277  ;;  %2370 = vmatprep.mubr.msk.bf16.mxu1 %vm546_vm0, %v499_v16 }
 0x11f   :  { %2371 = vmatmul.mubr.msk.bf16.vlgmr.msra.gmra.mrb[0].mxu1 %vm546_vm0, %v500_v17  ;;  %v3155_v20 = vpop.permute.xlu0 %397  ;;  %v332_v28 = vmul.f32 %v3121_v38, %v278_v19 }
 0x120   :  { %2387 = vmatpush3.bf16.msra.mxu1 %v2462_v36  ;;  %v333_v36 = vmul.f32 %v3121_v38, %v3126_v40  ;;  %v437_v13 = vmul.f32 %v3128_v41, %v3155_v20 }
 0x121   :  { %2388 = vmatprep.subr.bf16.mxu1 %v2463_v18 }
 0x122   :  { %v349_v49 = vadd.f32 %v333_v36, %v249_v37 }
 0x123   :  { %v193_v22 = vpop.permute.xlu1 %192 }
 0x124   :  { %2389 = vmatpush3.bf16.msra.mxu1 %v2463_v18  ;;  %v183_v23 = vpop.permute.xlu0 %182  ;;  %v250_v50 = vmul.f32 %v3124_v39, %v193_v22 }
 0x125   :  { %2390 = vmatprep.subr.bf16.mxu1 %v2464_v21  ;;  %v248_v26 = vmul.f32 %v3124_v39, %v183_v23 }
 0x126   :  { %v350_v55 = vadd.f32 %v334_v47, %v250_v50 }
 0x127   :  { %v198_v25 = vpop.permute.xlu1 %197  ;;  %v348_v30 = vadd.f32 %v332_v28, %v248_v26 }
 0x128   :  { %2391 = vmatpush3.bf16.msra.mxu1 %v2464_v21  ;;  %v251_v42 = vmul.f32 %v3124_v39, %v198_v25  ;;  %v208_v5 = vpop.permute.xlu0 %207 }
 0x129   :  { %2392 = vmatprep.subr.bf16.mxu1 %v2465_v24  ;;  %v448_v44 = vadd.f32 %v432_v29, %v348_v30  ;;  %v253_v12 = vmul.f32 %v3124_v39, %v208_v5 }
 0x12b   :  { %v471_v40 = vadd.f32 %v3145_v58, %v448_v44 }
 0x12c   :  { %v290_v33 = vpop.permute.xlu1 %289  ;;  %2393 = vmatpush3.bf16.msra.mxu1 %v2465_v24  ;;  %v213_v7 = vpop.permute.xlu0 %212 }
 0x12d   :  { %v335_v34 = vmul.f32 %v3121_v38, %v290_v33  ;;  %2394 = vmatprep.subr.bf16.mxu1 %v2466_v27  ;;  %v487_v59 = vmax.f32 %v471_v40, 0.0  ;;  %v254_v21 = vmul.f32 %v3124_v39, %v213_v7 }
 0x12f   :  { %v351_v45 = vadd.f32 %v335_v34, %v251_v42 }
 0x130   :  { %2395 = vmatpush3.bf16.msra.mxu1 %v2466_v27  ;;  %v223_v10 = vpop.permute.xlu0 %222 }
 0x131   :  { %v382_v46 = vpop.permute.xlu1 %381  ;;  %2396 = vmatprep.subr.bf16.mxu1 %v2467_v35  ;;  %v451_v52 = vadd.f32 %v435_v43, %v351_v45 }
 0x132   :  { %v433_v51 = vmul.f32 %v3128_v41, %v382_v46 }
 0x133   :  { %v474_v60 = vadd.f32 %v3145_v58, %v451_v52 }
 0x134   :  { %v449_v53 = vadd.f32 %v433_v51, %v349_v49  ;;  %2397 = vmatpush3.bf16.msra.mxu1 %v2467_v35 }
 0x135   :  { %v386_v54 = vpop.permute.xlu1 %385  ;;  %v490_v2 = vmax.f32 %v474_v60, 0.0  ;;  %v302_v16 = vpop.permute.xlu0 %301 }
 0x136   :  { %v472_v56 = vadd.f32 %v3145_v58, %v449_v53  ;;  %v434_v57 = vmul.f32 %v3128_v41, %v386_v54  ;;  %v338_v22 = vmul.f32 %v3121_v38, %v302_v16 }
 0x138   :  { %v488_v48 = vmax.f32 %v472_v56, 0.0  ;;  %v450_v61 = vadd.f32 %v434_v57, %v350_v55  ;;  %v354_v20 = vadd.f32 %v338_v22, %v254_v21 }
 0x139   :  { %v314_v53 = vpop.permute.xlu0 %313 }
 0x13a   :  { %v501_v62 = vpack.c.bf16 %v488_v48, %v487_v59  ;;  %v473_v63 = vadd.f32 %v3145_v58, %v450_v61  ;;  %v203_v0 = vpop.permute.xlu1 %202  ;;  %v256_v48 = vmul.f32 %v3124_v39, %v223_v10 }
 0x13b   :  { %v252_v18 = vmul.f32 %v3124_v39, %v203_v0 }
 0x13c   :  { %v489_v3 = vmax.f32 %v473_v63, 0.0  ;;  %2374 = vmatprep.mubr.msk.bf16.mxu1 %vm546_vm0, %v501_v62 }
 0x13d   :  { %v318_v55 = vpop.permute.xlu0 %317 }
 0x13e   :  { %v502_v4 = vpack.c.bf16 %v490_v2, %v489_v3  ;;  %v2468_v3 = vld [vmem:[#allocation5 + $0x30] sm:$0xff]  }
 0x13f   :  { %v294_v6 = vpop.permute.xlu1 %293  ;;  %2398 = vmatprep.subr.bf16.mxu1 %v2468_v3 }
 0x140   :  { %2375 = vmatmul.mubr.msk.bf16.gmra.mrb[4].mxu1 %vm546_vm0, %v502_v4  ;;  %v336_v17 = vmul.f32 %v3121_v38, %v294_v6  ;;  %v341_v4 = vmul.f32 %v3121_v38, %v314_v53 }
 0x141   :  { %2399 = vmatpush3.bf16.msra.mxu1 %v2468_v3 }
 0x142   :  { %v352_v24 = vadd.f32 %v336_v17, %v252_v18  ;;  %v410_v60 = vpop.permute.xlu0 %409 }
 0x143   :  { %v298_v8 = vpop.permute.xlu1 %297  ;;  %v440_v62 = vmul.f32 %v3128_v41, %v410_v60 }
 0x144   :  { %v337_v11 = vmul.f32 %v3121_v38, %v298_v8 }
 0x146   :  { %v353_v14 = vadd.f32 %v337_v11, %v253_v12  ;;  %v422_v2 = vpop.permute.xlu0 %421  ;;  %v2469_v11 = vld [vmem:[#allocation5 + $0x38] sm:$0xff]  }
 0x147   :  { %2400 = vmatprep.subr.bf16.mxu1 %v2469_v11 }
 0x148   :  { %v218_v9 = vpop.permute.xlu1 %217  ;;  %v453_v19 = vadd.f32 %v437_v13, %v353_v14  ;;  %v342_v13 = vmul.f32 %v3121_v38, %v318_v55  ;;  %2401 = vmatpush3.bf16.msra.mxu1 %v2469_v11 }
 0x149   :  { %v255_v35 = vmul.f32 %v3124_v39, %v218_v9  ;;  %v443_v9 = vmul.f32 %v3128_v41, %v422_v2 }
 0x14a   :  { %v476_v26 = vadd.f32 %v3145_v58, %v453_v19 }
 0x14c   :  { %v492_v34 = vmax.f32 %v476_v26, 0.0 }
 0x14d   :  { %v306_v15 = vpop.permute.xlu1 %305 }
 0x14e   :  { %v339_v29 = vmul.f32 %v3121_v38, %v306_v15 }
 0x150   :  { %v355_v43 = vadd.f32 %v339_v29, %v255_v35  ;;  %v2478_v35 = vld [vmem:[%s3420_s7 + $0x20] ss:$8 sps:$4 sm:$0xff]  }
 0x152   :  { %v394_v23 = vpop.permute.xlu1 %393 }
 0x153   :  { %v436_v25 = vmul.f32 %v3128_v41, %v394_v23 }
 0x155   :  { %v452_v27 = vadd.f32 %v436_v25, %v352_v24 }
 0x156   :  { %v402_v28 = vpop.permute.xlu1 %401 }
 0x157   :  { %v475_v30 = vadd.f32 %v3145_v58, %v452_v27  ;;  %v438_v33 = vmul.f32 %v3128_v41, %v402_v28 }
 0x159   :  { %v491_v36 = vmax.f32 %v475_v30, 0.0  ;;  %v454_v37 = vadd.f32 %v438_v33, %v354_v20  ;;  %v2470_v30 = vld [vmem:[%s3420_s7 + $0x4] ss:$8 sps:$4 sm:$0xff]   ;;  %v2473_v33 = vld [vmem:[%s3420_s7 + $0x14] ss:$8 sps:$4 sm:$0xff]  }
 0x15a   :  { %v406_v42 = vpop.permute.xlu1 %405  ;;  %992 = vmatprep.subr.bf16.mxu0 %v2470_v30 }
 0x15b   :  { %v503_v44 = vpack.c.bf16 %v492_v34, %v491_v36  ;;  %v439_v45 = vmul.f32 %v3128_v41, %v406_v42  ;;  %v477_v46 = vadd.f32 %v3145_v58, %v454_v37  ;;  %v2476_v34 = vld [vmem:[%s3420_s7 + $0x24] ss:$8 sps:$4 sm:$0xff]   ;;  %v2479_v36 = vld [vmem:[%s3420_s7 + $0x34] ss:$8 sps:$4 sm:$0xff]   ;;  %v2481_v37 = vld [vmem:[%s3420_s7 + $0x30] ss:$8 sps:$4 sm:$0xff]  }
 0x15c   :  { %v3241_v42 = vld [vmem:[%s3417_s4] ss:$0 sm:$0xff] }
 0x15d   :  { %v455_v47 = vadd.f32 %v439_v45, %v355_v43  ;;  %2378 = vmatprep.mubr.msk.bf16.mxu1 %vm546_vm0, %v503_v44  ;;  %v493_v51 = vmax.f32 %v477_v46, 0.0  ;;  %v2482_v43 = vld [vmem:[%s3420_s7 + $0x44] ss:$8 sps:$4 sm:$0xff]  }
 0x15f   :  { %v478_v49 = vadd.f32 %v3145_v58, %v455_v47  ;;  %v228_v50 = vpop.permute.xlu1 %227  ;;  %v2484_v47 = vld [vmem:[%s3420_s7 + $0x40] ss:$8 sps:$4 sm:$0xff]  }
 0x160   :  { %v257_v5 = vmul.f32 %v3124_v39, %v228_v50 }
 0x161   :  { %v494_v40 = vmax.f32 %v478_v49, 0.0 }
 0x162   :  { %v357_v12 = vadd.f32 %v341_v4, %v257_v5 }
 0x163   :  { %v504_v52 = vpack.c.bf16 %v494_v40, %v493_v51  ;;  %v2485_v51 = vld [vmem:[%s3420_s7 + $0x54] ss:$8 sps:$4 sm:$0xff]  }
 0x164   :  { %v310_v54 = vpop.permute.xlu1 %309 }
 0x165   :  { %2379 = vmatmul.mubr.msk.bf16.gmra.mrb[8].mxu1 %vm546_vm0, %v504_v52  ;;  %v340_v59 = vmul.f32 %v3121_v38, %v310_v54 }
 0x167   :  { %v356_v61 = vadd.f32 %v340_v59, %v256_v48 }
 0x169   :  { %v233_v56 = vpop.permute.xlu1 %232  ;;  %v456_v7 = vadd.f32 %v440_v62, %v356_v61 }
 0x16a   :  { %v258_v14 = vmul.f32 %v3124_v39, %v233_v56  ;;  %v2487_v56 = vld [vmem:[%s3420_s7 + $0x50] ss:$8 sps:$4 sm:$0xff]  }
 0x16b   :  { %v479_v16 = vadd.f32 %v3145_v58, %v456_v7 }
 0x16c   :  { %v358_v21 = vadd.f32 %v342_v13, %v258_v14 }
 0x16d   :  { %v238_v57 = vpop.permute.xlu1 %237  ;;  %v495_v24 = vmax.f32 %v479_v16, 0.0 }
 0x16e   :  { %v259_v6 = vmul.f32 %v3124_v39, %v238_v57 }
 0x172   :  { %v322_v63 = vpop.permute.xlu1 %321 }
 0x173   :  { %v343_v0 = vmul.f32 %v3121_v38, %v322_v63 }
 0x175   :  { %v359_v8 = vadd.f32 %v343_v0, %v259_v6 }
 0x177   :  { %v414_v10 = vpop.permute.xlu1 %413  ;;  %v459_v17 = vadd.f32 %v443_v9, %v359_v8 }
 0x178   :  { %v441_v15 = vmul.f32 %v3128_v41, %v414_v10 }
 0x179   :  { %v482_v25 = vadd.f32 %v3145_v58, %v459_v17 }
 0x17a   :  { %v457_v18 = vadd.f32 %v441_v15, %v357_v12 }
 0x17b   :  { %v418_v19 = vpop.permute.xlu1 %417  ;;  %v498_v20 = vmax.f32 %v482_v25, 0.0 }
 0x17c   :  { %v480_v22 = vadd.f32 %v3145_v58, %v457_v18  ;;  %v442_v23 = vmul.f32 %v3128_v41, %v418_v19  ;;  %v2472_v41 = vld [vmem:[%s3420_s7] ss:$8 sps:$4 sm:$0xff]  }
 0x17d   :  { %993 = vmatpush1.bf16.msra.mxu0 %v2472_v41 }
 0x17e   :  { %v496_v38 = vmax.f32 %v480_v22, 0.0  ;;  %v458_v26 = vadd.f32 %v442_v23, %v358_v21  ;;  %994 = vmatprep.subr.bf16.mxu0 %v2473_v33 }
 0x180   :  { %v505_v39 = vpack.c.bf16 %v496_v38, %v495_v24  ;;  %v481_v27 = vadd.f32 %v3145_v58, %v458_v26  ;;  %v2475_v58 = vld [vmem:[%s3420_s7 + $0x10] ss:$8 sps:$4 sm:$0xff]   ;;  %v2488_v26 = vld [vmem:[%s3420_s7 + $0x64] ss:$8 sps:$4 sm:$0xff]  }
 0x181   :  { %995 = vmatpush1.bf16.msra.mxu0 %v2475_v58 }
 0x182   :  { %v497_v28 = vmax.f32 %v481_v27, 0.0  ;;  %2382 = vmatprep.mubr.msk.bf16.mxu1 %vm546_vm0, %v505_v39  ;;  %996 = vmatprep.subr.bf16.mxu0 %v2476_v34  ;;  %v2490_v39 = vld [vmem:[%s3420_s7 + $0x60] ss:$8 sps:$4 sm:$0xff]   ;;  %v2491_v27 = vld [vmem:[%s3420_s7 + $0x74] ss:$8 sps:$4 sm:$0xff]  }
 0x184   :  { %v506_v29 = vpack.c.bf16 %v498_v20, %v497_v28  ;;  %v2493_v20 = vld [vmem:[%s3420_s7 + $0x70] ss:$8 sps:$4 sm:$0xff]  }
 0x185   :  { %997 = vmatpush1.bf16.msra.mxu0 %v2478_v35 }
 0x186   :  { %2383 = vmatmul.mubr.msk.bf16.gmra.mrb[12].mxu1 %vm546_vm0, %v506_v29  ;;  %998 = vmatprep.subr.bf16.mxu0 %v2479_v36 }
 0x189   :  { %999 = vmatpush1.bf16.msra.mxu0 %v2481_v37 }
 0x18a   :  { %1000 = vmatprep.subr.bf16.mxu0 %v2482_v43 }
 0x18d   :  { %1001 = vmatpush1.bf16.msra.mxu0 %v2484_v47  ;;  %v2494_v47 = vld [vmem:[#allocation7 + $0x40] sm:$0xff]  }
 0x18e   :  { %1002 = vmatprep.subr.bf16.mxu0 %v2485_v51  ;;  %2298 = vmatprep.subr.bf16.mxu1 %v2494_v47  ;;  %v2497_v51 = vld [vmem:[#allocation7 + $0x8] sm:$0xff]  }
 0x191   :  { %1003 = vmatpush1.bf16.msra.mxu0 %v2487_v56  ;;  %v2500_v56 = vld [vmem:[#allocation7 + $0x58] sm:$0xff]  }
 0x192   :  { %1004 = vmatprep.subr.bf16.mxu0 %v2488_v26 }
 0x195   :  { %1005 = vmatpush1.bf16.msra.mxu0 %v2490_v39 }
 0x196   :  { %1006 = vmatprep.subr.bf16.mxu0 %v2491_v27 }
 0x199   :  { %1007 = vmatpush1.bf16.msra.mxu0 %v2493_v20 }
 0x1f2   :  { %v2372_v44 = vpop.f32.mrb[0].mxu1 }
 0x1f3   :  { %v614_v45 = vadd.f32 %v2372_v44, %v3241_v42  ;;  %v605_v46 = vpop.f32.mrb[1].mxu1 }
 0x1f4   :  { %v606_v49 = vadd.f32 %v3241_v42, %v605_v46  ;;  %v2373_v50 = vpop.f32.mrb[2].mxu1 }
 0x1f5   :  { %v617_v40 = vadd.f32 %v2373_v50, %v3241_v42  ;;  %v608_v52 = vpop.f32.mrb[3].mxu1  ;;  %v670_v54 = vmax.f32 %v614_v45, 0.0  ;;  %v2496_v50 = vld [vmem:[#allocation7 + $0x48] sm:$0xff]  }
 0x1f6   :  { %v609_v53 = vadd.f32 %v3241_v42, %v608_v52  ;;  %v668_v57 = vmax.f32 %v606_v49, 0.0  ;;  %v2495_v49 = vld [vmem:[#allocation7] sm:$0xff]  }
 0x1f7   :  { %v671_v55 = vmax.f32 %v617_v40, 0.0  ;;  %v2498_v40 = vld [vmem:[#allocation7 + $0x50] sm:$0xff]  }
 0x1f8   :  { %v669_v59 = vmax.f32 %v609_v53, 0.0  ;;  %v2499_v53 = vld [vmem:[#allocation7 + $0x10] sm:$0xff]  }
 0x1f9   :  { %v685_v60 = vpack.c.bf16 %v671_v55, %v670_v54 }
 0x1fa   :  { %v684_v48 = vpack.c.bf16 %v669_v59, %v668_v57 }
 0x1fc   :  { %2402 = vmatprep.mubr.bf16.mxu1 %v684_v48 }
 0x1fd   :  { %2403 = vmatmul.mubr.bf16.vlgmr.msra.gmra.mrb[16].mxu1 %v685_v60 }
 0x1fe   :  { %2299 = vmatpush3.bf16.msra.mxu1 %v2495_v49 }
 0x1ff   :  { %2300 = vmatprep.subr.bf16.mxu1 %v2496_v50 }
 0x202   :  { %2301 = vmatpush3.bf16.msra.mxu1 %v2497_v51 }
 0x203   :  { %2302 = vmatprep.subr.bf16.mxu1 %v2498_v40 }
 0x206   :  { %2303 = vmatpush3.bf16.msra.mxu1 %v2499_v53 }
 0x207   :  { %2304 = vmatprep.subr.bf16.mxu1 %v2500_v56 }
 0x213   :  { %v2376_v61 = vpop.f32.mrb[4].mxu1 }
 0x214   :  { %v630_v62 = vadd.f32 %v2376_v61, %v3241_v42  ;;  %v621_v63 = vpop.f32.mrb[5].mxu1 }
 0x215   :  { %v622_v0 = vadd.f32 %v3241_v42, %v621_v63  ;;  %v2377_v2 = vpop.f32.mrb[6].mxu1 }
 0x216   :  { %v633_v3 = vadd.f32 %v2377_v2, %v3241_v42  ;;  %v624_v4 = vpop.f32.mrb[7].mxu1  ;;  %v674_v6 = vmax.f32 %v630_v62, 0.0  ;;  %v2501_v62 = vld [vmem:[#allocation7 + $0x18] sm:$0xff]   ;;  %v2502_v2 = vld [vmem:[#allocation7 + $0x60] sm:$0xff]  }
 0x217   :  { %v625_v5 = vadd.f32 %v3241_v42, %v624_v4  ;;  %v672_v8 = vmax.f32 %v622_v0, 0.0  ;;  %2305 = vmatpush3.bf16.msra.mxu1 %v2501_v62 }
 0x218   :  { %v675_v7 = vmax.f32 %v633_v3, 0.0  ;;  %2306 = vmatprep.subr.bf16.mxu1 %v2502_v2 }
 0x219   :  { %v673_v9 = vmax.f32 %v625_v5, 0.0 }
 0x21a   :  { %v687_v10 = vpack.c.bf16 %v675_v7, %v674_v6  ;;  %v2503_v7 = vld [vmem:[#allocation7 + $0x20] sm:$0xff]  }
 0x21b   :  { %v686_v11 = vpack.c.bf16 %v673_v9, %v672_v8  ;;  %v2504_v8 = vld [vmem:[#allocation7 + $0x68] sm:$0xff]   ;;  %2307 = vmatpush3.bf16.msra.mxu1 %v2503_v7 }
 0x21c   :  { %2308 = vmatprep.subr.bf16.mxu1 %v2504_v8 }
 0x21d   :  { %2406 = vmatprep.mubr.bf16.mxu1 %v686_v11 }
 0x21e   :  { %2407 = vmatmul.mubr.bf16.gmra.mrb[20].mxu1 %v687_v10 }
 0x238   :  { %v2380_v12 = vpop.f32.mrb[8].mxu1 }
 0x239   :  { %v646_v13 = vadd.f32 %v2380_v12, %v3241_v42  ;;  %v637_v14 = vpop.f32.mrb[9].mxu1 }
 0x23a   :  { %v638_v15 = vadd.f32 %v3241_v42, %v637_v14  ;;  %v2381_v16 = vpop.f32.mrb[10].mxu1 }
 0x23b   :  { %v649_v17 = vadd.f32 %v2381_v16, %v3241_v42  ;;  %v640_v18 = vpop.f32.mrb[11].mxu1  ;;  %v678_v21 = vmax.f32 %v646_v13, 0.0 }
 0x23c   :  { %v641_v19 = vadd.f32 %v3241_v42, %v640_v18  ;;  %v676_v23 = vmax.f32 %v638_v15, 0.0 }
 0x23d   :  { %v679_v22 = vmax.f32 %v649_v17, 0.0 }
 0x23e   :  { %v677_v24 = vmax.f32 %v641_v19, 0.0 }
 0x23f   :  { %v689_v25 = vpack.c.bf16 %v679_v22, %v678_v21 }
 0x240   :  { %v688_v38 = vpack.c.bf16 %v677_v24, %v676_v23 }
 0x242   :  { %2410 = vmatprep.mubr.bf16.mxu1 %v688_v38 }
 0x243   :  { %2411 = vmatmul.mubr.bf16.gmra.mrb[24].mxu1 %v689_v25 }
 0x259   :  { %v2384_v28 = vpop.f32.mrb[12].mxu1 }
 0x25a   :  { %v662_v29 = vadd.f32 %v2384_v28, %v3241_v42  ;;  %v653_v30 = vpop.f32.mrb[13].mxu1 }
 0x25b   :  { %v654_v41 = vadd.f32 %v3241_v42, %v653_v30  ;;  %v2385_v33 = vpop.f32.mrb[14].mxu1 }
 0x25c   :  { %v665_v58 = vadd.f32 %v2385_v33, %v3241_v42  ;;  %v656_v34 = vpop.f32.mrb[15].mxu1  ;;  %v682_v36 = vmax.f32 %v662_v29, 0.0 }
 0x25d   :  { %v657_v35 = vadd.f32 %v3241_v42, %v656_v34  ;;  %v680_v43 = vmax.f32 %v654_v41, 0.0  ;;  %v3286_v42 = vld [vmem:[%s3419_s6] ss:$0 sm:$0xff] }
 0x25e   :  { %v683_v37 = vmax.f32 %v665_v58, 0.0 }
 0x25f   :  { %v681_v44 = vmax.f32 %v657_v35, 0.0  ;;  %v2505_v35 = vld [vmem:[#allocation7 + $0x28] sm:$0xff]  }
 0x260   :  { %v691_v45 = vpack.c.bf16 %v683_v37, %v682_v36  ;;  %2309 = vmatpush3.bf16.msra.mxu1 %v2505_v35  ;;  %v2506_v36 = vld [vmem:[#allocation7 + $0x70] sm:$0xff]  }
 0x261   :  { %v690_v46 = vpack.c.bf16 %v681_v44, %v680_v43  ;;  %v2507_v37 = vld [vmem:[#allocation7 + $0x30] sm:$0xff]   ;;  %2310 = vmatprep.subr.bf16.mxu1 %v2506_v36  ;;  %v2508_v43 = vld [vmem:[#allocation7 + $0x78] sm:$0xff]  }
 0x262   :  { %v2509_v44 = vld [vmem:[#allocation7 + $0x38] sm:$0xff]  }
 0x263   :  { %2414 = vmatprep.mubr.bf16.mxu1 %v690_v46 }
 0x264   :  { %2415 = vmatmul.mubr.bf16.gmra.mrb[28].mxu1 %v691_v45 }
 0x265   :  { %2311 = vmatpush3.bf16.msra.mxu1 %v2507_v37 }
 0x266   :  { %2312 = vmatprep.subr.bf16.mxu1 %v2508_v43 }
 0x269   :  { %2313 = vmatpush3.bf16.msra.mxu1 %v2509_v44 }
 0x2d0   :  { %v2404_v52 = vpop.f32.mrb[16].mxu1 }
 0x2d1   :  { %v806_v54 = vadd.f32 %v2404_v52, %v3286_v42  ;;  %v797_v55 = vpop.f32.mrb[17].mxu1 }
 0x2d2   :  { %v798_v57 = vadd.f32 %v3286_v42, %v797_v55  ;;  %v2405_v59 = vpop.f32.mrb[18].mxu1 }
 0x2d3   :  { %v809_v60 = vadd.f32 %v2405_v59, %v3286_v42  ;;  %v800_v48 = vpop.f32.mrb[19].mxu1  ;;  %v862_v63 = vmax.f32 %v806_v54, 0.0 }
 0x2d4   :  { %v801_v61 = vadd.f32 %v3286_v42, %v800_v48  ;;  %v860_v3 = vmax.f32 %v798_v57, 0.0 }
 0x2d5   :  { %v863_v0 = vmax.f32 %v809_v60, 0.0  ;;  %v900_v60 = vld [vmem:[%s3421_s8] sm:$0x3] }
 0x2d6   :  { %v861_v4 = vmax.f32 %v801_v61, 0.0  ;;  %v3316_v48 = vrot.slane %v900_v60, %v3115_v32 }
 0x2d7   :  { %v877_v5 = vpack.c.bf16 %v863_v0, %v862_v63 }
 0x2d8   :  { %v876_v6 = vpack.c.bf16 %v861_v4, %v860_v3 }
 0x2da   :  { %1025 = vmatmul.mubr.bf16.vlgmr.msra.gmra.mrb[0].mxu0 %v876_v6 }
 0x2db   :  { %1034 = vmatprep.mubr.bf16.mxu0 %v2829_v1 }
 0x2e2   :  { %1035 = vmatmul.mubr.bf16.gmra.mrb[4].mxu0 %v877_v5 }
 0x2e3   :  { %1044 = vmatprep.mubr.bf16.mxu0 %v2829_v1 }
 0x2f1   :  { %v2408_v9 = vpop.f32.mrb[20].mxu1 }
 0x2f2   :  { %v822_v10 = vadd.f32 %v2408_v9, %v3286_v42  ;;  %v813_v11 = vpop.f32.mrb[21].mxu1 }
 0x2f3   :  { %v814_v12 = vadd.f32 %v3286_v42, %v813_v11  ;;  %v2409_v13 = vpop.f32.mrb[22].mxu1 }
 0x2f4   :  { %v825_v14 = vadd.f32 %v2409_v13, %v3286_v42  ;;  %v816_v15 = vpop.f32.mrb[23].mxu1  ;;  %v866_v17 = vmax.f32 %v822_v10, 0.0 }
 0x2f5   :  { %v817_v16 = vadd.f32 %v3286_v42, %v816_v15  ;;  %v864_v19 = vmax.f32 %v814_v12, 0.0 }
 0x2f6   :  { %v867_v18 = vmax.f32 %v825_v14, 0.0 }
 0x2f7   :  { %v865_v21 = vmax.f32 %v817_v16, 0.0 }
 0x2f8   :  { %v879_v22 = vpack.c.bf16 %v867_v18, %v866_v17 }
 0x2f9   :  { %v878_v23 = vpack.c.bf16 %v865_v21, %v864_v19 }
 0x2fb   :  { %1045 = vmatmul.mubr.bf16.gmra.mrb[8].mxu0 %v878_v23 }
 0x2fc   :  { %1054 = vmatprep.mubr.bf16.mxu0 %v2829_v1 }
 0x303   :  { %1055 = vmatmul.mubr.bf16.gmra.mrb[12].mxu0 %v879_v22 }
 0x304   :  { %1064 = vmatprep.mubr.bf16.mxu0 %v2829_v1 }
 0x316   :  { %v2412_v24 = vpop.f32.mrb[24].mxu1 }
 0x317   :  { %v838_v25 = vadd.f32 %v2412_v24, %v3286_v42  ;;  %v829_v38 = vpop.f32.mrb[25].mxu1 }
 0x318   :  { %v830_v26 = vadd.f32 %v3286_v42, %v829_v38  ;;  %v2413_v39 = vpop.f32.mrb[26].mxu1 }
 0x319   :  { %v841_v27 = vadd.f32 %v2413_v39, %v3286_v42  ;;  %v832_v20 = vpop.f32.mrb[27].mxu1  ;;  %v870_v29 = vmax.f32 %v838_v25, 0.0 }
 0x31a   :  { %v833_v28 = vadd.f32 %v3286_v42, %v832_v20  ;;  %v868_v41 = vmax.f32 %v830_v26, 0.0 }
 0x31b   :  { %v871_v30 = vmax.f32 %v841_v27, 0.0 }
 0x31c   :  { %v869_v33 = vmax.f32 %v833_v28, 0.0 }
 0x31d   :  { %v881_v58 = vpack.c.bf16 %v871_v30, %v870_v29 }
 0x31e   :  { %v880_v34 = vpack.c.bf16 %v869_v33, %v868_v41 }
 0x320   :  { %1065 = vmatmul.mubr.bf16.gmra.mrb[16].mxu0 %v880_v34 }
 0x321   :  { %1074 = vmatprep.mubr.bf16.mxu0 %v2829_v1 }
 0x328   :  { %1075 = vmatmul.mubr.bf16.gmra.mrb[20].mxu0 %v881_v58 }
 0x329   :  { %1084 = vmatprep.mubr.bf16.mxu0 %v2829_v1 }
 0x337   :  { %v2416_v45 = vpop.f32.mrb[28].mxu1 }
 0x338   :  { %v854_v46 = vadd.f32 %v2416_v45, %v3286_v42  ;;  %v845_v47 = vpop.f32.mrb[29].mxu1 }
 0x339   :  { %v846_v49 = vadd.f32 %v3286_v42, %v845_v47  ;;  %v2417_v50 = vpop.f32.mrb[30].mxu1 }
 0x33a   :  { %v857_v51 = vadd.f32 %v2417_v50, %v3286_v42  ;;  %v848_v40 = vpop.f32.mrb[31].mxu1  ;;  %v874_v53 = vmax.f32 %v854_v46, 0.0 }
 0x33b   :  { %v849_v52 = vadd.f32 %v3286_v42, %v848_v40  ;;  %v872_v55 = vmax.f32 %v846_v49, 0.0  ;;  %v3319_v42 = vrot.slane %v900_v60, %v3113_v31 }
 0x33c   :  { %v875_v54 = vmax.f32 %v857_v51, 0.0 }
 0x33d   :  { %v873_v56 = vmax.f32 %v849_v52, 0.0 }
 0x33e   :  { %v883_v57 = vpack.c.bf16 %v875_v54, %v874_v53 }
 0x33f   :  { %v882_v59 = vpack.c.bf16 %v873_v56, %v872_v55 }
 0x341   :  { %1085 = vmatmul.mubr.bf16.gmra.mrb[24].mxu0 %v882_v59 }
 0x342   :  { %1094 = vmatprep.mubr.bf16.mxu0 %v2829_v1 }
 0x349   :  { %1095 = vmatmul.mubr.bf16.gmra.mrb[28].mxu0 %v883_v57 }
 0x34a   :  { %1582 = vmatprep.mubr.bf16.mxu0 %v2829_v1 }
 0x3ad   :  { %v1026_v61 = vpop.f32.mrb[0].mxu0 }
 0x3ae   :  { %v1027_v62 = vadd.f32 %v1026_v61, %v3316_v48  ;;  %v1028_v63 = vpop.f32.mrb[1].mxu0 }
 0x3af   :  { %v1029_v0 = vadd.f32 %v1028_v63, %v3319_v42  ;;  %v1030_v2 = vpop.f32.mrb[2].mxu0 }
 0x3b0   :  { %v1031_v3 = vadd.f32 %v1030_v2, %v3316_v48  ;;  %v1032_v1 = vpop.f32.mrb[3].mxu0  ;;  %v1105_v5 = vmax.f32 %v1027_v62, 0.0 }
 0x3b1   :  { %v1033_v4 = vadd.f32 %v1032_v1, %v3319_v42  ;;  %v1106_v7 = vmax.f32 %v1029_v0, 0.0 }
 0x3b2   :  { %v1107_v6 = vmax.f32 %v1031_v3, 0.0 }
 0x3b3   :  { %v1108_v8 = vmax.f32 %v1033_v4, 0.0 }
 0x3b4   :  { %v1137_v9 = vpack.c.bf16 %v1107_v6, %v1105_v5 }
 0x3b5   :  { %v1138_v10 = vpack.c.bf16 %v1108_v8, %v1106_v7  ;;  %v1036_v11 = vpop.f32.mrb[4].mxu0 }
 0x3b6   :  { %v1037_v12 = vadd.f32 %v1036_v11, %v3316_v48  ;;  %v1038_v13 = vpop.f32.mrb[5].mxu0 }
 0x3b7   :  { %v1039_v14 = vadd.f32 %v1038_v13, %v3319_v42  ;;  %v1040_v15 = vpop.f32.mrb[6].mxu0  ;;  %1320 = vmatprep.mubr.bf16.mxu1 %v1138_v10 }
 0x3b8   :  { %v1041_v16 = vadd.f32 %v1040_v15, %v3316_v48  ;;  %v1042_v17 = vpop.f32.mrb[7].mxu0  ;;  %1321 = vmatmul.mubr.bf16.vlgmr.msra.gmra.mrb[32].mxu1 %v1137_v9  ;;  %v1109_v19 = vmax.f32 %v1037_v12, 0.0 }
 0x3b9   :  { %v1043_v18 = vadd.f32 %v1042_v17, %v3319_v42  ;;  %v1110_v22 = vmax.f32 %v1039_v14, 0.0 }
 0x3ba   :  { %v1111_v21 = vmax.f32 %v1041_v16, 0.0 }
 0x3bb   :  { %v1112_v23 = vmax.f32 %v1043_v18, 0.0 }
 0x3bc   :  { %v1139_v24 = vpack.c.bf16 %v1111_v21, %v1109_v19 }
 0x3bd   :  { %v1140_v25 = vpack.c.bf16 %v1112_v23, %v1110_v22 }
 0x3bf   :  { %1328 = vmatprep.mubr.bf16.mxu1 %v1140_v25 }
 0x3c0   :  { %1329 = vmatmul.mubr.bf16.gmra.mrb[36].mxu1 %v1139_v24 }
 0x3ce   :  { %v1046_v38 = vpop.f32.mrb[8].mxu0 }
 0x3cf   :  { %v1047_v26 = vadd.f32 %v1046_v38, %v3316_v48  ;;  %v1048_v39 = vpop.f32.mrb[9].mxu0 }
 0x3d0   :  { %v1049_v27 = vadd.f32 %v1048_v39, %v3319_v42  ;;  %v1050_v20 = vpop.f32.mrb[10].mxu0 }
 0x3d1   :  { %v1051_v28 = vadd.f32 %v1050_v20, %v3316_v48  ;;  %v1052_v29 = vpop.f32.mrb[11].mxu0  ;;  %v1113_v41 = vmax.f32 %v1047_v26, 0.0 }
 0x3d2   :  { %v1053_v30 = vadd.f32 %v1052_v29, %v3319_v42  ;;  %v1114_v58 = vmax.f32 %v1049_v27, 0.0 }
 0x3d3   :  { %v1115_v33 = vmax.f32 %v1051_v28, 0.0 }
 0x3d4   :  { %v1116_v34 = vmax.f32 %v1053_v30, 0.0 }
 0x3d5   :  { %v1141_v35 = vpack.c.bf16 %v1115_v33, %v1113_v41 }
 0x3d6   :  { %v1142_v36 = vpack.c.bf16 %v1116_v34, %v1114_v58  ;;  %v1056_v37 = vpop.f32.mrb[12].mxu0 }
 0x3d7   :  { %v1057_v43 = vadd.f32 %v1056_v37, %v3316_v48  ;;  %v1058_v44 = vpop.f32.mrb[13].mxu0 }
 0x3d8   :  { %v1059_v45 = vadd.f32 %v1058_v44, %v3319_v42  ;;  %v1060_v46 = vpop.f32.mrb[14].mxu0  ;;  %1336 = vmatprep.mubr.bf16.mxu1 %v1142_v36 }
 0x3d9   :  { %v1061_v47 = vadd.f32 %v1060_v46, %v3316_v48  ;;  %v1062_v49 = vpop.f32.mrb[15].mxu0  ;;  %1337 = vmatmul.mubr.bf16.gmra.mrb[40].mxu1 %v1141_v35  ;;  %v1117_v51 = vmax.f32 %v1057_v43, 0.0 }
 0x3da   :  { %v1063_v50 = vadd.f32 %v1062_v49, %v3319_v42  ;;  %v1118_v52 = vmax.f32 %v1059_v45, 0.0 }
 0x3db   :  { %v1119_v40 = vmax.f32 %v1061_v47, 0.0 }
 0x3dc   :  { %v1120_v53 = vmax.f32 %v1063_v50, 0.0 }
 0x3dd   :  { %v1143_v54 = vpack.c.bf16 %v1119_v40, %v1117_v51 }
 0x3de   :  { %v1144_v55 = vpack.c.bf16 %v1120_v53, %v1118_v52  ;;  %v2510_v52 = vld [vmem:[#allocation8] ss:$8 sps:$4 sm:$0xff]   ;;  %v2512_v53 = vld [vmem:[#allocation8 + $0x4] ss:$8 sps:$4 sm:$0xff]  }
 0x3df   :  { %1550 = vmatprep.subr.bf16.mxu0 %v2512_v53 }
 0x3e0   :  { %1344 = vmatprep.mubr.bf16.mxu1 %v1144_v55  ;;  %1551 = vmatpush1.bf16.msra.mxu0 %v2510_v52  ;;  %v2513_v55 = vld [vmem:[#allocation8 + $0x10] ss:$8 sps:$4 sm:$0xff]   ;;  %v2557_v52 = vld [vmem:[#allocation10 + $0x74] ss:$8 sps:$4 sm:$0xff]  }
 0x3e1   :  { %1345 = vmatmul.mubr.bf16.gmra.mrb[44].mxu1 %v1143_v54  ;;  %v2515_v54 = vld [vmem:[#allocation8 + $0x14] ss:$8 sps:$4 sm:$0xff]  }
 0x3e2   :  { %1552 = vmatprep.subr.bf16.mxu0 %v2515_v54 }
 0x3e4   :  { %1553 = vmatpush1.bf16.msra.mxu0 %v2513_v55 }
 0x3f3   :  { %v1066_v56 = vpop.f32.mrb[16].mxu0 }
 0x3f4   :  { %v1067_v57 = vadd.f32 %v1066_v56, %v3316_v48  ;;  %v1068_v59 = vpop.f32.mrb[17].mxu0  ;;  %v2516_v56 = vld [vmem:[#allocation8 + $0x20] ss:$8 sps:$4 sm:$0xff]  }
 0x3f5   :  { %v1069_v60 = vadd.f32 %v1068_v59, %v3319_v42  ;;  %v1070_v61 = vpop.f32.mrb[18].mxu0  ;;  %v2522_v59 = vld [vmem:[#allocation8 + $0x40] ss:$8 sps:$4 sm:$0xff]  }
 0x3f6   :  { %v1071_v62 = vadd.f32 %v1070_v61, %v3316_v48  ;;  %v1072_v63 = vpop.f32.mrb[19].mxu0  ;;  %v1121_v2 = vmax.f32 %v1067_v57, 0.0  ;;  %v2521_v57 = vld [vmem:[#allocation8 + $0x34] ss:$8 sps:$4 sm:$0xff]  }
 0x3f7   :  { %v1073_v0 = vadd.f32 %v1072_v63, %v3319_v42  ;;  %v1122_v1 = vmax.f32 %v1069_v60, 0.0  ;;  %v2524_v60 = vld [vmem:[#allocation8 + $0x44] ss:$8 sps:$4 sm:$0xff]  }
 0x3f8   :  { %v1123_v3 = vmax.f32 %v1071_v62, 0.0 }
 0x3f9   :  { %v1124_v4 = vmax.f32 %v1073_v0, 0.0 }
 0x3fa   :  { %v1145_v5 = vpack.c.bf16 %v1123_v3, %v1121_v2  ;;  %v2527_v2 = vld [vmem:[#allocation8 + $0x54] ss:$8 sps:$4 sm:$0xff]  }
 0x3fb   :  { %v1146_v6 = vpack.c.bf16 %v1124_v4, %v1122_v1  ;;  %v1076_v7 = vpop.f32.mrb[20].mxu0  ;;  %v2525_v1 = vld [vmem:[#allocation8 + $0x50] ss:$8 sps:$4 sm:$0xff]  }
 0x3fc   :  { %v1077_v8 = vadd.f32 %v1076_v7, %v3316_v48  ;;  %v1078_v9 = vpop.f32.mrb[21].mxu0  ;;  %v2528_v7 = vld [vmem:[#allocation8 + $0x60] ss:$8 sps:$4 sm:$0xff]  }
 0x3fd   :  { %v1079_v10 = vadd.f32 %v1078_v9, %v3319_v42  ;;  %v1080_v11 = vpop.f32.mrb[22].mxu0  ;;  %1352 = vmatprep.mubr.bf16.mxu1 %v1146_v6  ;;  %v3356_v6 = vld [vmem:[%s3423_s10] ss:$0 sm:$0xff] }
 0x3fe   :  { %v1081_v12 = vadd.f32 %v1080_v11, %v3316_v48  ;;  %v1082_v13 = vpop.f32.mrb[23].mxu0  ;;  %1353 = vmatmul.mubr.bf16.gmra.mrb[48].mxu1 %v1145_v5  ;;  %v1125_v15 = vmax.f32 %v1077_v8, 0.0  ;;  %v2530_v5 = vld [vmem:[#allocation8 + $0x64] ss:$8 sps:$4 sm:$0xff]  }
 0x3ff   :  { %v1083_v14 = vadd.f32 %v1082_v13, %v3319_v42  ;;  %v1126_v17 = vmax.f32 %v1079_v10, 0.0  ;;  %v2533_v13 = vld [vmem:[#allocation8 + $0x74] ss:$8 sps:$4 sm:$0xff]  }
 0x400   :  { %v1127_v16 = vmax.f32 %v1081_v12, 0.0 }
 0x401   :  { %v1128_v18 = vmax.f32 %v1083_v14, 0.0 }
 0x402   :  { %v1147_v19 = vpack.c.bf16 %v1127_v16, %v1125_v15  ;;  %v2531_v15 = vld [vmem:[#allocation8 + $0x70] ss:$8 sps:$4 sm:$0xff]  }
 0x403   :  { %v1148_v21 = vpack.c.bf16 %v1128_v18, %v1126_v17 }
 0x405   :  { %1360 = vmatprep.mubr.bf16.mxu1 %v1148_v21 }
 0x406   :  { %1361 = vmatmul.mubr.bf16.gmra.mrb[52].mxu1 %v1147_v19 }
 0x414   :  { %v1086_v22 = vpop.f32.mrb[24].mxu0 }
 0x415   :  { %v1087_v23 = vadd.f32 %v1086_v22, %v3316_v48  ;;  %v1088_v24 = vpop.f32.mrb[25].mxu0 }
 0x416   :  { %v1089_v25 = vadd.f32 %v1088_v24, %v3319_v42  ;;  %v1090_v38 = vpop.f32.mrb[26].mxu0 }
 0x417   :  { %v1091_v26 = vadd.f32 %v1090_v38, %v3316_v48  ;;  %v1092_v39 = vpop.f32.mrb[27].mxu0  ;;  %v1129_v20 = vmax.f32 %v1087_v23, 0.0  ;;  %v2534_v38 = vld [vmem:[#allocation10] ss:$8 sps:$4 sm:$0xff]  }
 0x418   :  { %v1093_v27 = vadd.f32 %v1092_v39, %v3319_v42  ;;  %v1130_v29 = vmax.f32 %v1089_v25, 0.0  ;;  %v2539_v39 = vld [vmem:[#allocation10 + $0x14] ss:$8 sps:$4 sm:$0xff]  }
 0x419   :  { %v1131_v28 = vmax.f32 %v1091_v26, 0.0  ;;  %v2536_v26 = vld [vmem:[#allocation10 + $0x4] ss:$8 sps:$4 sm:$0xff]  }
 0x41a   :  { %v1132_v30 = vmax.f32 %v1093_v27, 0.0  ;;  %1799 = vmatprep.subr.bf16.mxu1 %v2536_v26 }
 0x41b   :  { %v1149_v41 = vpack.c.bf16 %v1131_v28, %v1129_v20  ;;  %1800 = vmatpush1.bf16.msra.mxu1 %v2534_v38  ;;  %v2537_v20 = vld [vmem:[#allocation10 + $0x10] ss:$8 sps:$4 sm:$0xff]   ;;  %v2542_v28 = vld [vmem:[#allocation10 + $0x24] ss:$8 sps:$4 sm:$0xff]  }
 0x41c   :  { %v1150_v33 = vpack.c.bf16 %v1132_v30, %v1130_v29  ;;  %v1096_v58 = vpop.f32.mrb[28].mxu0  ;;  %1801 = vmatprep.subr.bf16.mxu1 %v2539_v39  ;;  %v2540_v29 = vld [vmem:[#allocation10 + $0x20] ss:$8 sps:$4 sm:$0xff]   ;;  %v2545_v30 = vld [vmem:[#allocation10 + $0x34] ss:$8 sps:$4 sm:$0xff]  }
 0x41d   :  { %v1097_v34 = vadd.f32 %v1096_v58, %v3316_v48  ;;  %v1098_v35 = vpop.f32.mrb[29].mxu0  ;;  %v2546_v58 = vld [vmem:[#allocation10 + $0x40] ss:$8 sps:$4 sm:$0xff]  }
 0x41e   :  { %v1099_v36 = vadd.f32 %v1098_v35, %v3319_v42  ;;  %v1100_v37 = vpop.f32.mrb[30].mxu0  ;;  %1368 = vmatprep.mubr.bf16.mxu1 %v1150_v33  ;;  %v2548_v33 = vld [vmem:[#allocation10 + $0x44] ss:$8 sps:$4 sm:$0xff]  }
 0x41f   :  { %v1101_v43 = vadd.f32 %v1100_v37, %v3316_v48  ;;  %v1102_v44 = vpop.f32.mrb[31].mxu0  ;;  %1369 = vmatmul.mubr.bf16.gmra.mrb[56].mxu1 %v1149_v41  ;;  %v1133_v46 = vmax.f32 %v1097_v34, 0.0  ;;  %v2518_v48 = vld [vmem:[#allocation8 + $0x24] ss:$8 sps:$4 sm:$0xff]   ;;  %v2543_v41 = vld [vmem:[#allocation10 + $0x30] ss:$8 sps:$4 sm:$0xff]  }
 0x420   :  { %v1103_v45 = vadd.f32 %v1102_v44, %v3319_v42  ;;  %v1134_v49 = vmax.f32 %v1099_v36, 0.0  ;;  %1554 = vmatprep.subr.bf16.mxu0 %v2518_v48  ;;  %v2519_v42 = vld [vmem:[#allocation8 + $0x30] ss:$8 sps:$4 sm:$0xff]   ;;  %1802 = vmatpush1.bf16.msra.mxu1 %v2537_v20  ;;  %v2551_v34 = vld [vmem:[#allocation10 + $0x54] ss:$8 sps:$4 sm:$0xff]  }
 0x421   :  { %v1135_v47 = vmax.f32 %v1101_v43, 0.0  ;;  %1555 = vmatpush1.bf16.msra.mxu0 %v2516_v56  ;;  %1803 = vmatprep.subr.bf16.mxu1 %v2542_v28  ;;  %v2549_v44 = vld [vmem:[#allocation10 + $0x50] ss:$8 sps:$4 sm:$0xff]  }
 0x422   :  { %v1136_v50 = vmax.f32 %v1103_v45, 0.0  ;;  %1556 = vmatprep.subr.bf16.mxu0 %v2521_v57 }
 0x423   :  { %v1151_v51 = vpack.c.bf16 %v1135_v47, %v1133_v46  ;;  %v2554_v46 = vld [vmem:[#allocation10 + $0x64] ss:$8 sps:$4 sm:$0xff]  }
 0x424   :  { %v1152_v40 = vpack.c.bf16 %v1136_v50, %v1134_v49  ;;  %1804 = vmatpush1.bf16.msra.mxu1 %v2540_v29 }
 0x425   :  { %1557 = vmatpush1.bf16.msra.mxu0 %v2519_v42  ;;  %1805 = vmatprep.subr.bf16.mxu1 %v2545_v30 }
 0x426   :  { %1376 = vmatprep.mubr.bf16.mxu1 %v1152_v40  ;;  %1558 = vmatprep.subr.bf16.mxu0 %v2524_v60  ;;  %v2552_v40 = vld [vmem:[#allocation10 + $0x60] ss:$8 sps:$4 sm:$0xff]  }
 0x427   :  { %1377 = vmatmul.mubr.bf16.gmra.mrb[60].mxu1 %v1151_v51 }
 0x428   :  { %1806 = vmatpush1.bf16.msra.mxu1 %v2543_v41 }
 0x429   :  { %1559 = vmatpush1.bf16.msra.mxu0 %v2522_v59  ;;  %1807 = vmatprep.subr.bf16.mxu1 %v2548_v33  ;;  %v2555_v59 = vld [vmem:[#allocation10 + $0x70] ss:$8 sps:$4 sm:$0xff]  }
 0x42a   :  { %1560 = vmatprep.subr.bf16.mxu0 %v2527_v2 }
 0x42c   :  { %1808 = vmatpush1.bf16.msra.mxu1 %v2546_v58 }
 0x42d   :  { %1561 = vmatpush1.bf16.msra.mxu0 %v2525_v1  ;;  %1809 = vmatprep.subr.bf16.mxu1 %v2551_v34  ;;  %v2563_v1 = vld [vmem:[#allocation10 + $0x94] ss:$8 sps:$4 sm:$0xff]  }
 0x42e   :  { %1562 = vmatprep.subr.bf16.mxu0 %v2530_v5 }
 0x430   :  { %1810 = vmatpush1.bf16.msra.mxu1 %v2549_v44 }
 0x431   :  { %1563 = vmatpush1.bf16.msra.mxu0 %v2528_v7  ;;  %1811 = vmatprep.subr.bf16.mxu1 %v2554_v46 }
 0x432   :  { %1564 = vmatprep.subr.bf16.mxu0 %v2533_v13  ;;  %v2567_v13 = vld [vmem:[#allocation10 + $0xb0] ss:$8 sps:$4 sm:$0xff]  }
 0x434   :  { %1812 = vmatpush1.bf16.msra.mxu1 %v2552_v40 }
 0x435   :  { %1565 = vmatpush1.bf16.msra.mxu0 %v2531_v15  ;;  %1813 = vmatprep.subr.bf16.mxu1 %v2557_v52  ;;  %v2570_v15 = vld [vmem:[#allocation10 + $0xc0] ss:$8 sps:$4 sm:$0xff]  }
 0x438   :  { %1814 = vmatpush1.bf16.msra.mxu1 %v2555_v59 }
 0x48b   :  { %v2314_v61 = vpop.f32.mrb[32].mxu1 }
 0x48c   :  { %v2315_v62 = vpop.f32.mrb[33].mxu1 }
 0x48d   :  { %v2316_v63 = vadd.f32 %v2315_v62, %v2314_v61  ;;  %v2317_v0 = vpop.f32.mrb[34].mxu1  ;;  %v2560_v61 = vld [vmem:[#allocation10 + $0x84] ss:$8 sps:$4 sm:$0xff]  }
 0x48e   :  { %v2318_v3 = vpop.f32.mrb[35].mxu1  ;;  %1815 = vmatprep.subr.bf16.mxu1 %v2560_v61 }
 0x48f   :  { %v2319_v4 = vadd.f32 %v2318_v3, %v2317_v0  ;;  %v1323_v10 = vadd.f32 %v2316_v63, %v3356_v6  ;;  %v2558_v3 = vld [vmem:[#allocation10 + $0x80] ss:$8 sps:$4 sm:$0xff]  }
 0x490   :  { %1816 = vmatpush1.bf16.msra.mxu1 %v2558_v3 }
 0x491   :  { %v1326_v16 = vadd.f32 %v2319_v4, %v3356_v6  ;;  %v1385_v19 = vmax.f32 %v1323_v10, 0.0  ;;  %1817 = vmatprep.subr.bf16.mxu1 %v2563_v1 }
 0x493   :  { %v2320_v8 = vpop.f32.mrb[36].mxu1  ;;  %v1386_v23 = vmax.f32 %v1326_v16, 0.0  ;;  %v2575_v16 = vld [vmem:[#allocation10 + $0xd4] ss:$8 sps:$4 sm:$0xff]  }
 0x494   :  { %v2321_v9 = vpop.f32.mrb[37].mxu1 }
 0x495   :  { %v2322_v11 = vadd.f32 %v2321_v9, %v2320_v8  ;;  %v2323_v12 = vpop.f32.mrb[38].mxu1  ;;  %v2561_v8 = vld [vmem:[#allocation10 + $0x90] ss:$8 sps:$4 sm:$0xff]   ;;  %v2566_v9 = vld [vmem:[#allocation10 + $0xa4] ss:$8 sps:$4 sm:$0xff]  }
 0x496   :  { %v2324_v14 = vpop.f32.mrb[39].mxu1  ;;  %1818 = vmatpush1.bf16.msra.mxu1 %v2561_v8 }
 0x497   :  { %v1331_v17 = vadd.f32 %v2322_v11, %v3356_v6  ;;  %v2325_v18 = vadd.f32 %v2324_v14, %v2323_v12  ;;  %v2564_v11 = vld [vmem:[#allocation10 + $0xa0] ss:$8 sps:$4 sm:$0xff]   ;;  %1819 = vmatprep.subr.bf16.mxu1 %v2566_v9  ;;  %v2569_v12 = vld [vmem:[#allocation10 + $0xb4] ss:$8 sps:$4 sm:$0xff]   ;;  %v2572_v14 = vld [vmem:[#allocation10 + $0xc4] ss:$8 sps:$4 sm:$0xff]  }
 0x499   :  { %v1387_v21 = vmax.f32 %v1331_v17, 0.0  ;;  %v1334_v22 = vadd.f32 %v2325_v18, %v3356_v6  ;;  %v2573_v17 = vld [vmem:[#allocation10 + $0xd0] ss:$8 sps:$4 sm:$0xff]  }
 0x49a   :  { %1820 = vmatpush1.bf16.msra.mxu1 %v2564_v11 }
 0x49b   :  { %v1401_v24 = vmax.f32 %v1385_v19, %v1387_v21  ;;  %v1388_v25 = vmax.f32 %v1334_v22, 0.0  ;;  %1821 = vmatprep.subr.bf16.mxu1 %v2569_v12 }
 0x49d   :  { %v1402_v27 = vmax.f32 %v1386_v23, %v1388_v25 }
 0x49e   :  { %1822 = vmatpush1.bf16.msra.mxu1 %v2567_v13 }
 0x49f   :  { %1823 = vmatprep.subr.bf16.mxu1 %v2572_v14 }
 0x4a2   :  { %1824 = vmatpush1.bf16.msra.mxu1 %v2570_v15 }
 0x4a3   :  { %1825 = vmatprep.subr.bf16.mxu1 %v2575_v16 }
 0x4a6   :  { %1826 = vmatpush1.bf16.msra.mxu1 %v2573_v17 }
 0x4ac   :  { %v2326_v35 = vpop.f32.mrb[40].mxu1 }
 0x4ad   :  { %v2327_v36 = vpop.f32.mrb[41].mxu1 }
 0x4ae   :  { %v2328_v37 = vadd.f32 %v2327_v36, %v2326_v35  ;;  %v2329_v43 = vpop.f32.mrb[42].mxu1 }
 0x4af   :  { %v2330_v45 = vpop.f32.mrb[43].mxu1 }
 0x4b0   :  { %v1339_v47 = vadd.f32 %v2328_v37, %v3356_v6  ;;  %v2331_v49 = vadd.f32 %v2330_v45, %v2329_v43 }
 0x4b2   :  { %v1389_v50 = vmax.f32 %v1339_v47, 0.0  ;;  %v1342_v51 = vadd.f32 %v2331_v49, %v3356_v6 }
 0x4b4   :  { %v1403_v53 = vmax.f32 %v1401_v24, %v1389_v50  ;;  %v1390_v54 = vmax.f32 %v1342_v51, 0.0  ;;  %v2332_v55 = vpop.f32.mrb[44].mxu1 }
 0x4b5   :  { %v2333_v48 = vpop.f32.mrb[45].mxu1 }
 0x4b6   :  { %v1404_v56 = vmax.f32 %v1402_v27, %v1390_v54  ;;  %v2334_v42 = vadd.f32 %v2333_v48, %v2332_v55  ;;  %v2335_v57 = vpop.f32.mrb[46].mxu1 }
 0x4b7   :  { %v2336_v60 = vpop.f32.mrb[47].mxu1 }
 0x4b8   :  { %v1347_v62 = vadd.f32 %v2334_v42, %v3356_v6  ;;  %v2337_v63 = vadd.f32 %v2336_v60, %v2335_v57 }
 0x4ba   :  { %v1391_v0 = vmax.f32 %v1347_v62, 0.0  ;;  %v1350_v2 = vadd.f32 %v2337_v63, %v3356_v6 }
 0x4bc   :  { %v1405_v4 = vmax.f32 %v1403_v53, %v1391_v0  ;;  %v1392_v5 = vmax.f32 %v1350_v2, 0.0 }
 0x4be   :  { %v1406_v7 = vmax.f32 %v1404_v56, %v1392_v5 }
 0x4c0   :  { %v1407_v10 = vmax.f32 %v1405_v4, %v1406_v7 }
 0x4c2   :  { %v1408_v52 = vrot.slane %v1407_v10, 4 }
 0x4c4   :  { %v1409_v60 = vmax.f32 %v1407_v10, %v1408_v52  ;;  %v2615_v52 = vld [vmem:[#allocation11 + $0xb0] ss:$8 sps:$4 sm:$0xff]  }
 0x4c6   :  { %v1410_v2 = vrot.slane %v1409_v60, 2 }
 0x4c8   :  { %v1411_v5 = vmax.f32 %v1409_v60, %v1410_v2 }
 0x4ca   :  { %v1412_v9 = vrot.slane %v1411_v5, 1 }
 0x4cc   :  { %v1413_v13 = vmax.f32 %v1411_v5, %v1412_v9  ;;  %v2626_v5 = vld [vmem:[#allocation11 + $0xe4] ss:$8 sps:$4 sm:$0xff]   ;;  %v2627_v9 = vld [vmem:[#allocation11 + $0xf0] ss:$8 sps:$4 sm:$0xff]  }
 0x4ce   :  { %v1433_v10 = vpack.c.bf16 %v1413_v13, %v1413_v13 }
 0x4d1   :  { %v2338_v18 = vpop.f32.mrb[48].mxu1 }
 0x4d2   :  { %v2339_v19 = vpop.f32.mrb[49].mxu1 }
 0x4d3   :  { %v2340_v21 = vadd.f32 %v2339_v19, %v2338_v18  ;;  %v2341_v22 = vpop.f32.mrb[50].mxu1 }
 0x4d4   :  { %v2342_v23 = vpop.f32.mrb[51].mxu1 }
 0x4d5   :  { %v2343_v24 = vadd.f32 %v2342_v23, %v2341_v22  ;;  %v1355_v26 = vadd.f32 %v2340_v21, %v3356_v6  ;;  %v2578_v23 = vld [vmem:[#allocation10 + $0xe4] ss:$8 sps:$4 sm:$0xff]  }
 0x4d6   :  { %1827 = vmatprep.subr.bf16.mxu1 %v2578_v23 }
 0x4d7   :  { %v1358_v28 = vadd.f32 %v2343_v24, %v3356_v6  ;;  %v1393_v41 = vmax.f32 %v1355_v26, 0.0  ;;  %v2576_v24 = vld [vmem:[#allocation10 + $0xe0] ss:$8 sps:$4 sm:$0xff]  }
 0x4d8   :  { %1828 = vmatpush1.bf16.msra.mxu1 %v2576_v24  ;;  %v2582_v26 = vld [vmem:[#allocation11] ss:$8 sps:$4 sm:$0xff]  }
 0x4d9   :  { %v2344_v25 = vpop.f32.mrb[52].mxu1  ;;  %v1394_v34 = vmax.f32 %v1358_v28, 0.0  ;;  %v2590_v28 = vld [vmem:[#allocation11 + $0x24] ss:$8 sps:$4 sm:$0xff]  }
 0x4da   :  { %v2345_v38 = vpop.f32.mrb[53].mxu1 }
 0x4db   :  { %v2346_v39 = vadd.f32 %v2345_v38, %v2344_v25  ;;  %v2347_v27 = vpop.f32.mrb[54].mxu1  ;;  %v2581_v25 = vld [vmem:[#allocation10 + $0xf4] ss:$8 sps:$4 sm:$0xff]   ;;  %v2579_v38 = vld [vmem:[#allocation10 + $0xf0] ss:$8 sps:$4 sm:$0xff]  }
 0x4dc   :  { %v2348_v20 = vpop.f32.mrb[55].mxu1  ;;  %1829 = vmatprep.subr.bf16.mxu1 %v2581_v25 }
 0x4dd   :  { %v1363_v29 = vadd.f32 %v2346_v39, %v3356_v6  ;;  %v2349_v30 = vadd.f32 %v2348_v20, %v2347_v27  ;;  %1830 = vmatpush1.bf16.msra.mxu1 %v2579_v38  ;;  %v2584_v39 = vld [vmem:[#allocation11 + $0x4] ss:$8 sps:$4 sm:$0xff]   ;;  %v2587_v27 = vld [vmem:[#allocation11 + $0x14] ss:$8 sps:$4 sm:$0xff]   ;;  %v2585_v20 = vld [vmem:[#allocation11 + $0x10] ss:$8 sps:$4 sm:$0xff]  }
 0x4de   :  { %2048 = vmatprep.subr.bf16.mxu0 %v2584_v39 }
 0x4df   :  { %v1395_v33 = vmax.f32 %v1363_v29, 0.0  ;;  %v1366_v58 = vadd.f32 %v2349_v30, %v3356_v6  ;;  %v2588_v29 = vld [vmem:[#allocation11 + $0x20] ss:$8 sps:$4 sm:$0xff]   ;;  %v2593_v30 = vld [vmem:[#allocation11 + $0x34] ss:$8 sps:$4 sm:$0xff]  }
 0x4e1   :  { %v1414_v35 = vmax.f32 %v1393_v41, %v1395_v33  ;;  %v1396_v36 = vmax.f32 %v1366_v58, 0.0  ;;  %v2591_v41 = vld [vmem:[#allocation11 + $0x30] ss:$8 sps:$4 sm:$0xff]   ;;  %v2596_v33 = vld [vmem:[#allocation11 + $0x44] ss:$8 sps:$4 sm:$0xff]  }
 0x4e2   :  { %v2594_v58 = vld [vmem:[#allocation11 + $0x40] ss:$8 sps:$4 sm:$0xff]  }
 0x4e3   :  { %v1415_v37 = vmax.f32 %v1394_v34, %v1396_v36  ;;  %v2599_v34 = vld [vmem:[#allocation11 + $0x54] ss:$8 sps:$4 sm:$0xff]   ;;  %v2602_v36 = vld [vmem:[#allocation11 + $0x64] ss:$8 sps:$4 sm:$0xff]  }
 0x4f2   :  { %v2350_v43 = vpop.f32.mrb[56].mxu1 }
 0x4f3   :  { %v2351_v44 = vpop.f32.mrb[57].mxu1 }
 0x4f4   :  { %v2352_v45 = vadd.f32 %v2351_v44, %v2350_v43  ;;  %v2353_v46 = vpop.f32.mrb[58].mxu1  ;;  %v2605_v43 = vld [vmem:[#allocation11 + $0x74] ss:$8 sps:$4 sm:$0xff]   ;;  %v2603_v44 = vld [vmem:[#allocation11 + $0x70] ss:$8 sps:$4 sm:$0xff]  }
 0x4f5   :  { %v2354_v47 = vpop.f32.mrb[59].mxu1 }
 0x4f6   :  { %v1371_v49 = vadd.f32 %v2352_v45, %v3356_v6  ;;  %v2355_v50 = vadd.f32 %v2354_v47, %v2353_v46  ;;  %v2608_v45 = vld [vmem:[#allocation11 + $0x84] ss:$8 sps:$4 sm:$0xff]   ;;  %v2606_v46 = vld [vmem:[#allocation11 + $0x80] ss:$8 sps:$4 sm:$0xff]   ;;  %v2611_v47 = vld [vmem:[#allocation11 + $0x94] ss:$8 sps:$4 sm:$0xff]  }
 0x4f8   :  { %v1397_v51 = vmax.f32 %v1371_v49, 0.0  ;;  %v1374_v40 = vadd.f32 %v2355_v50, %v3356_v6  ;;  %v2609_v49 = vld [vmem:[#allocation11 + $0x90] ss:$8 sps:$4 sm:$0xff]   ;;  %v2614_v50 = vld [vmem:[#allocation11 + $0xa4] ss:$8 sps:$4 sm:$0xff]  }
 0x4fa   :  { %v1416_v53 = vmax.f32 %v1414_v35, %v1397_v51  ;;  %v1398_v54 = vmax.f32 %v1374_v40, 0.0  ;;  %v2356_v55 = vpop.f32.mrb[60].mxu1  ;;  %v2597_v35 = vld [vmem:[#allocation11 + $0x50] ss:$8 sps:$4 sm:$0xff]   ;;  %v2612_v51 = vld [vmem:[#allocation11 + $0xa0] ss:$8 sps:$4 sm:$0xff]  }
 0x4fb   :  { %v2357_v48 = vpop.f32.mrb[61].mxu1  ;;  %v2617_v40 = vld [vmem:[#allocation11 + $0xb4] ss:$8 sps:$4 sm:$0xff]  }
 0x4fc   :  { %v1417_v56 = vmax.f32 %v1415_v37, %v1398_v54  ;;  %v2358_v42 = vadd.f32 %v2357_v48, %v2356_v55  ;;  %v2359_v57 = vpop.f32.mrb[62].mxu1  ;;  %v2600_v37 = vld [vmem:[#allocation11 + $0x60] ss:$8 sps:$4 sm:$0xff]   ;;  %v2623_v55 = vld [vmem:[#allocation11 + $0xd4] ss:$8 sps:$4 sm:$0xff]  }
 0x4fd   :  { %v2360_v59 = vpop.f32.mrb[63].mxu1  ;;  %v2618_v54 = vld [vmem:[#allocation11 + $0xc0] ss:$8 sps:$4 sm:$0xff]   ;;  %v2621_v48 = vld [vmem:[#allocation11 + $0xd0] ss:$8 sps:$4 sm:$0xff]  }
 0x4fe   :  { %v1379_v61 = vadd.f32 %v2358_v42, %v3356_v6  ;;  %v2361_v62 = vadd.f32 %v2360_v59, %v2359_v57 }
 0x500   :  { %v1399_v63 = vmax.f32 %v1379_v61, 0.0  ;;  %v1382_v0 = vadd.f32 %v2361_v62, %v3356_v6  ;;  %v1465_v6 = vunpack.c.l.b16 %v1433_v10 }
 0x502   :  { %v1418_v3 = vmax.f32 %v1416_v53, %v1399_v63  ;;  %v1400_v1 = vmax.f32 %v1382_v0, 0.0  ;;  %v2620_v53 = vld [vmem:[#allocation11 + $0xc4] ss:$8 sps:$4 sm:$0xff]  }
 0x504   :  { %v1419_v4 = vmax.f32 %v1417_v56, %v1400_v1  ;;  %v1451_v56 = vld [vmem:[%s3425_s12] sm:$0x3] }
 0x505   :  { %v1456_v42 = vrot.slane %v1451_v56, %v3115_v32  ;;  %v1460_v57 = vrot.slane %v1451_v56, %v3113_v31 }
 0x506   :  { %v1420_v7 = vmax.f32 %v1418_v3, %v1419_v4 }
 0x508   :  { %v1421_v8 = vrot.slane %v1420_v7, 4 }
 0x50a   :  { %v1422_v11 = vmax.f32 %v1420_v7, %v1421_v8  ;;  %v2624_v7 = vld [vmem:[#allocation11 + $0xe0] ss:$8 sps:$4 sm:$0xff]   ;;  %v2629_v8 = vld [vmem:[#allocation11 + $0xf4] ss:$8 sps:$4 sm:$0xff]  }
 0x50c   :  { %v1423_v12 = vrot.slane %v1422_v11, 2 }
 0x50e   :  { %v1424_v14 = vmax.f32 %v1422_v11, %v1423_v12  ;;  %v1627_v11 = vld [vmem:[%s3427_s14] sm:$0x3]  ;;  %s2762_s14 = scalar_lea.vmem %s2108_s27, 32 }
 0x50f   :  { %v1632_v12 = vrot.slane %v1627_v11, %v3115_v32  ;;  %p2763_p6 = scmp.ne.s32.totalorder %s2108_s27, %s2762_s14  ;;  %p2768_p8 = scmp.lt.s32.totalorder %s2762_s14, %s2762_s14 }
 0x510   :  { %v1425_v15 = vrot.slane %v1424_v14, 1 }
 0x511   :  { %p2769_p9 = por %p2768_p8, %p2767_p7 }
 0x512   :  { %v1426_v16 = vmax.f32 %v1424_v14, %v1425_v15 }
 0x513   :  { %p2770_p10 = pnand %p2769_p9, %p2763_p6 }
 0x514   :  { %v1434_v17 = vpack.c.bf16 %v1426_v16, %v1426_v16  ;;  %v1430_v18 = vsel %vm1429_vm1, %v1426_v16, %v1413_v13  ;;  %v1636_v13 = vrot.slane %v1627_v11, %v3113_v31 }
 0x515   :  { %1432 = vst [vmem:[#allocation13] sm:$0x3] %v1430_v18 }
 0x516   :  { %v1466_v19 = vunpack.c.l.b16 %v1434_v17 }
 0x518   :  { %v1467_v21 = vsel %vm1429_vm1, %v1466_v19, %v1465_v6 }
 0x519   :  { %v1468_v22 = vpack.c.b16 %v1467_v21, %v1467_v21 }
 0x51b   :  { %1583 = vmatmul.mubr.bf16.vlgmr.msra.gmra.mrb[32].mxu0 %v1468_v22 }
 0x51c   :  { %2049 = vmatpush1.bf16.msra.mxu0 %v2582_v26 }
 0x51d   :  { %2050 = vmatprep.subr.bf16.mxu0 %v2587_v27 }
 0x520   :  { %2051 = vmatpush1.bf16.msra.mxu0 %v2585_v20 }
 0x521   :  { %2052 = vmatprep.subr.bf16.mxu0 %v2590_v28 }
 0x524   :  { %2053 = vmatpush1.bf16.msra.mxu0 %v2588_v29 }
 0x525   :  { %2054 = vmatprep.subr.bf16.mxu0 %v2593_v30 }
 0x528   :  { %2055 = vmatpush1.bf16.msra.mxu0 %v2591_v41 }
 0x529   :  { %2056 = vmatprep.subr.bf16.mxu0 %v2596_v33 }
 0x52c   :  { %2057 = vmatpush1.bf16.msra.mxu0 %v2594_v58 }
 0x52d   :  { %2058 = vmatprep.subr.bf16.mxu0 %v2599_v34 }
 0x530   :  { %2059 = vmatpush1.bf16.msra.mxu0 %v2597_v35 }
 0x531   :  { %2060 = vmatprep.subr.bf16.mxu0 %v2602_v36 }
 0x534   :  { %2061 = vmatpush1.bf16.msra.mxu0 %v2600_v37 }
 0x535   :  { %2062 = vmatprep.subr.bf16.mxu0 %v2605_v43 }
 0x538   :  { %2063 = vmatpush1.bf16.msra.mxu0 %v2603_v44 }
 0x539   :  { %2064 = vmatprep.subr.bf16.mxu0 %v2608_v45 }
 0x53c   :  { %2065 = vmatpush1.bf16.msra.mxu0 %v2606_v46 }
 0x53d   :  { %2066 = vmatprep.subr.bf16.mxu0 %v2611_v47 }
 0x540   :  { %2067 = vmatpush1.bf16.msra.mxu0 %v2609_v49 }
 0x541   :  { %2068 = vmatprep.subr.bf16.mxu0 %v2614_v50 }
 0x544   :  { %2069 = vmatpush1.bf16.msra.mxu0 %v2612_v51 }
 0x545   :  { %2070 = vmatprep.subr.bf16.mxu0 %v2617_v40 }
 0x548   :  { %2071 = vmatpush1.bf16.msra.mxu0 %v2615_v52 }
 0x549   :  { %2072 = vmatprep.subr.bf16.mxu0 %v2620_v53 }
 0x54c   :  { %2073 = vmatpush1.bf16.msra.mxu0 %v2618_v54 }
 0x54d   :  { %2074 = vmatprep.subr.bf16.mxu0 %v2623_v55 }
 0x550   :  { %2075 = vmatpush1.bf16.msra.mxu0 %v2621_v48 }
 0x551   :  { %2076 = vmatprep.subr.bf16.mxu0 %v2626_v5 }
 0x554   :  { %2077 = vmatpush1.bf16.msra.mxu0 %v2624_v7 }
 0x555   :  { %2078 = vmatprep.subr.bf16.mxu0 %v2629_v8 }
 0x558   :  { %2079 = vmatpush1.bf16.msra.mxu0 %v2627_v9 }
 0x5ee   :  { %v1584_v59 = vpop.f32.mrb[32].mxu0 }
 0x5ef   :  { %v1585_v60 = vadd.f32 %v1584_v59, %v1456_v42  ;;  %v1586_v61 = vpop.f32.mrb[33].mxu0 }
 0x5f0   :  { %v1587_v62 = vadd.f32 %v1586_v61, %v1460_v57  ;;  %v1588_v63 = vpop.f32.mrb[34].mxu0 }
 0x5f1   :  { %v1591_v0 = vmax.f32 %v1585_v60, 0.0  ;;  %v1589_v2 = vpop.f32.mrb[35].mxu0 }
 0x5f2   :  { %v1592_v3 = vmax.f32 %v1587_v62, 0.0 }
 0x5f3   :  { %v1593_v4 = vpack.c.bf16 %v1591_v0, %v1591_v0 }
 0x5f4   :  { %v1594_v1 = vpack.c.bf16 %v1592_v3, %v1592_v3 }
 0x5f6   :  { %1831 = vmatprep.mubr.bf16.mxu1 %v1594_v1 }
 0x5f7   :  { %1832 = vmatmul.mubr.bf16.vlgmr.msra.gmra.mrb[64].mxu1 %v1593_v4 }
 0x6ca   :  { %v1833_v14 = vpop.f32.mrb[64].mxu1 }
 0x6cb   :  { %v1834_v15 = vadd.f32 %v1833_v14, %v1632_v12  ;;  %v1835_v10 = vpop.f32.mrb[65].mxu1 }
 0x6cc   :  { %v1836_v16 = vadd.f32 %v1835_v10, %v1636_v13  ;;  %v1837_v17 = vpop.f32.mrb[66].mxu1 }
 0x6cd   :  { %v1840_v18 = vmax.f32 %v1834_v15, 0.0  ;;  %v1838_v6 = vpop.f32.mrb[67].mxu1 }
 0x6ce   :  { %v1841_v19 = vmax.f32 %v1836_v16, 0.0 }
 0x6cf   :  { %v1842_v22 = vpack.c.bf16 %v1840_v18, %v1840_v18 }
 0x6d0   :  { %v1843_v21 = vpack.c.bf16 %v1841_v19, %v1841_v19 }
 0x6d2   :  { %2080 = vmatprep.mubr.bf16.mxu0 %v1843_v21 }
 0x6d3   :  { %2081 = vmatmul.mubr.bf16.vlgmr.msra.gmra.mrb[36].mxu0 %v1842_v22 }
 0x6d4   :  { %2773 = shalt.err (!%p2770_p10)
}
 0x6d5   :  { %s2774_s25 = scalar_lea.hbm %s3430_s17, 32 }
 0x6d6   :  { %p2775_p11 = scmp.ne.s32.totalorder %s3430_s17, %s2774_s25  ;;  %p2778_p12 = scmp.lt.u32.totalorder %s2774_s25, %s3430_s17 }
 0x6d8   :  { %p2780_p13 = pnand %p2778_p12, %p2775_p11 }
 0x6da   :  { %2783 = shalt.err (!%p2780_p13)
}
 0x6db   :  { %2110 = dma.vmem_to_hbm [thread:$0]  %s2108_s27, 32, %s3430_s17, [#allocation4]   ;;  %v1876_v23 = vld [vmem:[%s3429_s16] sm:$0x3] }
 0x6dc   :  { %v1881_v24 = vrot.slane %v1876_v23, %v3115_v32  ;;  %v1885_v25 = vrot.slane %v1876_v23, %v3113_v31  ;;  %s2832_s0 = smov [#allocation14]  }
 0x6dd   :  { %s2117_s2 = sshll.u32 %s2832_s0, 4  ;;  %s2118_s2 = int_to_ptr.vmem [resolvable:$true] %s2117_s2 }
 0x6de   :  { %s2784_s17 = scalar_lea.vmem %s2118_s2, 64  ;;  %p2789_p1 = scmp.lt.s32.totalorder %s2118_s2, %s2118_s2 }
 0x6df   :  { %p2785_p0 = scmp.ne.s32.totalorder %s2118_s2, %s2784_s17  ;;  %p2790_p2 = scmp.lt.s32.totalorder %s2784_s17, %s2784_s17 }
 0x6e1   :  { %p2791_p3 = por %p2790_p2, %p2789_p1 }
 0x6e3   :  { %p2792_p4 = pnand %p2791_p3, %p2785_p0 }
 0x7a6   :  { %v2082_v38 = vpop.f32.mrb[36].mxu0 }
 0x7a7   :  { %v2083_v26 = vadd.f32 %v2082_v38, %v1881_v24  ;;  %v2084_v39 = vpop.f32.mrb[37].mxu0 }
 0x7a8   :  { %v2085_v27 = vadd.f32 %v2084_v39, %v1885_v25  ;;  %v2086_v20 = vpop.f32.mrb[38].mxu0 }
 0x7a9   :  { %v2087_v28 = vpop.f32.mrb[39].mxu0 }
 0x7aa   :  { %v2091_v29 = vcombine.low %v2083_v26, %v2085_v27 }
 0x7ac   :  { %2269 = vst.sshfl [vmem:[#allocation14] sm:$0x33 pattern:$0x76325410] %v2091_v29 }
 0x7ad   :  { %2795 = shalt.err (!%p2792_p4)
}
 0x7ae   :  { %s2796_s19 = scalar_lea.hbm %s3431_s18, 64 }
 0x7af   :  { %p2797_p5 = scmp.ne.s32.totalorder %s3431_s18, %s2796_s19  ;;  %p2800_p6 = scmp.lt.u32.totalorder %s2796_s19, %s3431_s18 }
 0x7b1   :  { %p2802_p7 = pnand %p2800_p6, %p2797_p5 }
 0x7b3   :  { %2805 = shalt.err (!%p2802_p7)
}
 0x7b4   :  { %2120 = dma.vmem_to_hbm [thread:$0]  %s2118_s2, 64, %s3431_s18, [#allocation15]  }
 0x7b5   :  { %2814 = dma.done.wait [#allocation4], 32  }
 0x7b6   :  { %2815 = vsyncadd [#allocation4], 4294967264 }
 0x7b7   :  { %2816 = dma.done.wait [#allocation15], 64  }
 0x7b8   :  { %2817 = vsyncadd [#allocation15], 4294967232 }
 0x7b9   :  { %2127 = vsyncpa [#allocation3], 1 }
 0x7ba   :  { %2128 = vsyncpa [#allocation6], 1 }
 0x7bb   :  { %2129 = vsyncpa [#allocation9], 1 }
 0x7bc   :  { %2130 = vsyncpa [#allocation12], 1 }
 0x7bd   :  { %2131 = vsyncpa [#allocation4], 1 }
 0x7be   :  { %2132 = vsyncpa [#allocation15], 1 }

</bundles_post_ra>
